<compile_context>
chip_gen: v7x
topology: tpu7x:2x2x1
jax: 0.10.0
libtpu: 0.0.40
codegen_flags: <defaults>
</compile_context>

<pallas_src>
import jax
import jax.numpy as jnp
from jax import lax
from jax.experimental import pallas as pl
from jax.experimental.pallas import tpu as pltpu

LANES = 128      # vreg lane width: TB = LANES // N set-vectors share one lane axis
OUT_PAD = 128    # lane-dense padded output width (first n_classes columns are valid)


# ---------------------------------------------------------------------------
# Pallas kernel factory: one batch tile of K*TB elements per grid step.
# ---------------------------------------------------------------------------
def _make_kernel(c_in, dim, out_ch, N, TB, K, mxu_dtype):
    J = TB * N       # one folded 128-lane sub-slab (batch-tile * set positions)
    KJ = K * J       # lanes processed per grid step

    def dotf(a, b):
        return jnp.dot(a.astype(mxu_dtype), b.astype(mxu_dtype),
                       preferred_element_type=jnp.float32)

    def kernel(x_ref, wconv_ref, bconv_ref, poolw_ref, wmlp_ref, bmlp_ref,
               smat_ref, out_ref):
        # ---- conv: two kernel-size-1 Conv1d == channel matmuls over the full
        #      K*128 folded lane axis; h is (dim, KJ) lane-dense, f32-accumulated.
        x = x_ref[...]                                      # (c_in, KJ)
        w1 = wconv_ref[:, :c_in]                            # (dim, c_in)
        w2 = wconv_ref[:, LANES:LANES + dim]                # (dim, dim)
        h = dotf(w1, x) + bconv_ref[:, 0:1]
        h = jnp.maximum(h, 0.0)
        h = dotf(w2, h) + bconv_ref[:, 1:2]                 # (dim, KJ) f32

        # Static within-chunk lane positions (period N; identical for every sub-slab)
        # and the per-shift masks used both for the roll select and the tie-break.
        lane_mod = lax.broadcasted_iota(jnp.int32, (dim, J), 1) % N
        shift_masks = [lane_mod >= s for s in range(1, N)]

        poolw = poolw_ref[...]                              # (dim, N) f32

        pooled_parts = []
        for kk in range(K):                                 # static unrolled sub-slabs
            hs = h[:, kk * J:(kk + 1) * J]                  # (dim, 128), lane-aligned

            # ---- FSPool rank via N-1 pltpu.roll lane shifts (no (dim,J,J) tensor).
            # For shift s, the in-chunk neighbour at offset -s (mod N) is
            #   roll(hs, s)      where lane % N >= s
            #   roll(hs, s - N)  otherwise,
            # and that neighbour has a smaller in-chunk index exactly when
            # lane % N >= s, giving the stable tie-break for equal values.
            rank = jnp.zeros((dim, J), jnp.float32)
            for s in range(1, N):
                m = shift_masks[s - 1]
                sh = jnp.where(m,
                               pltpu.roll(hs, shift=s, axis=1),
                               pltpu.roll(hs, shift=(s - N) % J, axis=1))
                before = (sh > hs) | ((sh == hs) & m)
                rank = rank + before.astype(jnp.float32)    # integer-valued f32

            # Gather the piecewise-linear pooling weight at each element's rank with a
            # short unrolled select-accumulate (2-D lane-dense tiles only).
            # TODO(synk): if this N-1 select chain shows up as the VALU hot spot,
            # shrink it (e.g. binary-select tree on the bits of rank).
            gw = jnp.where(rank == 0.0, poolw[:, 0:1], 0.0)
            for r in range(1, N):
                gw = gw + jnp.where(rank == jnp.float32(r), poolw[:, r:r + 1], 0.0)
            prod = hs * gw                                  # (dim, J)

            # Per-chunk weighted sums via one f32 MXU matmul with the (TB, J) chunk
            # indicator, contracting the lane axis -> (TB, dim) batch-major.
            pooled_parts.append(
                lax.dot_general(smat_ref[...], prod,
                                dimension_numbers=(((1,), (1,)), ((), ())),
                                preferred_element_type=jnp.float32))

        pooled = (pooled_parts[0] if K == 1
                  else jnp.concatenate(pooled_parts, axis=0))   # (K*TB, dim)

        # ---- lin MLP + classifier: M = K*TB batch rows, lane-dense final store.
        l1t = wmlp_ref[:, 0:dim]                                # (dim, dim)
        l2t = wmlp_ref[:, LANES:LANES + out_ch]                 # (dim, out_ch)
        c1t = wmlp_ref[:out_ch, 2 * LANES:2 * LANES + out_ch]   # (out_ch, out_ch)
        c2t = wmlp_ref[:out_ch, 3 * LANES:3 * LANES + OUT_PAD]  # (out_ch, OUT_PAD)
        z = jnp.maximum(dotf(pooled, l1t) + bmlp_ref[0:1, :dim], 0.0)
        z = dotf(z, l2t) + bmlp_ref[1:2, :out_ch]
        z = jnp.maximum(dotf(z, c1t) + bmlp_ref[2:3, :out_ch], 0.0)
        z = dotf(z, c2t) + bmlp_ref[3:4, :]                     # (K*TB, OUT_PAD)
        out_ref[...] = z                                        # lane-dense store

    return kernel


# ---------------------------------------------------------------------------
# FSPool piecewise-linear weight evaluation at ratios j/(N-1) (full sets).
# ---------------------------------------------------------------------------
def _fspool_weights(Wp, N, n_pieces):
    ratios = jnp.arange(N, dtype=jnp.float32) / jnp.float32(max(N - 1, 1))
    index = n_pieces * ratios
    idx = jnp.floor(index).astype(jnp.int32)
    frac = index - idx.astype(jnp.float32)
    left = Wp[:, idx]                                   # (dim, N)
    right = Wp[:, jnp.minimum(idx + 1, n_pieces)]       # (dim, N)
    return (1.0 - frac)[None, :] * left + frac[None, :] * right


# ---------------------------------------------------------------------------
# One-time constant packing (hoisted out of the per-call path).
# ---------------------------------------------------------------------------
def prepare_params(params, N, n_pieces=20, mxu_dtype=jnp.bfloat16):
    (W1, b1, W2, b2, Wp, L1, lb1, L2, lb2, C1, cb1, C2, cb2) = params
    dim, c_in = W1.shape
    out_ch = L2.shape[0]
    n_classes = C2.shape[0]

    assert LANES % N == 0, "set size must divide 128 for lane folding"
    # TODO(synk): generalize to N not dividing 128 (pad the set axis with -inf
    # elements carrying zero pooling weight).
    assert c_in <= LANES and dim <= LANES and out_ch <= LANES and n_classes <= OUT_PAD
    assert dim % 8 == 0 and out_ch % 8 == 0
    TB = LANES // N
    J = TB * N

    wconv = jnp.zeros((dim, 2 * LANES), jnp.float32)
    wconv = wconv.at[:, :c_in].set(W1).at[:, LANES:LANES + dim].set(W2)
    bconv = jnp.stack([b1, b2], axis=1)                               # (dim, 2)

    wmlp = jnp.zeros((dim, 3 * LANES + OUT_PAD), jnp.float32)
    wmlp = (wmlp.at[:, :dim].set(L1.T)
                 .at[:, LANES:LANES + out_ch].set(L2.T)
                 .at[:out_ch, 2 * LANES:2 * LANES + out_ch].set(C1.T)
                 .at[:out_ch, 3 * LANES:3 * LANES + n_classes].set(C2.T))
    bmlp = jnp.zeros((4, OUT_PAD), jnp.float32)
    bmlp = (bmlp.at[0, :dim].set(lb1).at[1, :out_ch].set(lb2)
                 .at[2, :out_ch].set(cb1).at[3, :n_classes].set(cb2))

    pool_w = _fspool_weights(Wp, N, n_pieces)                         # (dim, N)

    # Chunk-sum indicator used to reduce each N-lane chunk on the MXU.
    lane = jnp.arange(J)
    smat = (jnp.arange(TB)[:, None] == (lane // N)[None, :]).astype(jnp.float32)

    return dict(
        wconv=wconv.astype(mxu_dtype), bconv=bconv, poolw=pool_w,
        wmlp=wmlp.astype(mxu_dtype), bmlp=bmlp, smat=smat,
        c_in=c_in, dim=dim, out_ch=out_ch, n_classes=n_classes,
        N=N, TB=TB, mxu_dtype=mxu_dtype)


# ---------------------------------------------------------------------------
# Forward wrapper
# ---------------------------------------------------------------------------
def fs_encoder_forward(x, prep, k_max=4):
    B, c_in, N = x.shape
    assert c_in == prep["c_in"] and N == prep["N"]
    dim, out_ch, n_classes = prep["dim"], prep["out_ch"], prep["n_classes"]
    TB = prep["TB"]
    J = TB * N                                  # 128

    # Slab batching: K 128-lane slabs per grid step, capped so that at least two
    # "parallel" grid steps remain (v7x has 2 TensorCores per chip).
    steps_tb = (B + TB - 1) // TB
    K = max(1, min(k_max, steps_tb // 2))
    tile_b = K * TB
    KJ = K * J

    B_pad = ((B + tile_b - 1) // tile_b) * tile_b
    if B_pad != B:
        x = jnp.concatenate([x, jnp.zeros((B_pad - B, c_in, N), x.dtype)], axis=0)
    # Fold (batch, set) into the lane axis: column b*N + p holds (batch b, set pos p).
    # TODO(synk): if this standalone transpose shows up in profiles, produce x in
    # (c_in, B*N) layout upstream instead of re-laying it out here every call.
    x_fold = jnp.transpose(x, (1, 0, 2)).reshape(c_in, B_pad * N).astype(jnp.float32)

    in_specs = [
        pl.BlockSpec((c_in, KJ), lambda i: (0, i)),                  # folded x slab
        pl.BlockSpec((dim, 2 * LANES), lambda i: (0, 0)),            # packed conv W
        pl.BlockSpec((dim, 2), lambda i: (0, 0)),                    # conv biases
        pl.BlockSpec((dim, N), lambda i: (0, 0)),                    # pooling weights
        pl.BlockSpec((dim, 3 * LANES + OUT_PAD), lambda i: (0, 0)),  # packed MLP W
        pl.BlockSpec((4, OUT_PAD), lambda i: (0, 0)),                # MLP biases
        pl.BlockSpec((TB, J), lambda i: (0, 0)),                     # chunk indicator
    ]
    out_specs = pl.BlockSpec((tile_b, OUT_PAD), lambda i: (i, 0))

    kernel = _make_kernel(c_in, dim, out_ch, N, TB, K, prep["mxu_dtype"])
    out = pl.pallas_call(
        kernel,
        out_shape=jax.ShapeDtypeStruct((B_pad, OUT_PAD), jnp.float32),
        grid_spec=pltpu.PrefetchScalarGridSpec(
            num_scalar_prefetch=0,
            grid=(B_pad // tile_b,),
            in_specs=in_specs,
            out_specs=out_specs,
        ),
        compiler_params=pltpu.CompilerParams(
            dimension_semantics=("parallel",)),
    )(x_fold, prep["wconv"], prep["bconv"], prep["poolw"],
      prep["wmlp"], prep["bmlp"], prep["smat"])
    return out[:B, :n_classes]


# ---------------------------------------------------------------------------
# Pure-JAX reference (uses a real sort) for correctness checking.
# ---------------------------------------------------------------------------
def reference_forward(x, params, n_pieces=20):
    (W1, b1, W2, b2, Wp, L1, lb1, L2, lb2, C1, cb1, C2, cb2) = params
    N = x.shape[2]
    h = jnp.einsum('dc,bcn->bdn', W1, x) + b1[None, :, None]
    h = jnp.maximum(h, 0.0)
    h = jnp.einsum('dc,bcn->bdn', W2, h) + b2[None, :, None]
    pool_w = _fspool_weights(Wp, N, n_pieces)
    h_sorted = -jnp.sort(-h, axis=2)                   # descending sort
    pooled = jnp.sum(h_sorted * pool_w[None, :, :], axis=2)
    z = jnp.maximum(pooled @ L1.T + lb1[None, :], 0.0)
    z = z @ L2.T + lb2[None, :]
    z = jnp.maximum(z @ C1.T + cb1[None, :], 0.0)
    return z @ C2.T + cb2[None, :]


# ---------------------------------------------------------------------------
# Deterministic synthetic parameter init (module shapes; no checkpoint load).
# ---------------------------------------------------------------------------
def init_params(key, c_in, dim, out_ch, n_pieces):
    ks = jax.random.split(key, 7)
    s = 0.1
    W1 = s * jax.random.normal(ks[0], (dim, c_in), jnp.float32)
    b1 = jnp.zeros((dim,), jnp.float32)
    W2 = s * jax.random.normal(ks[1], (dim, dim), jnp.float32)
    b2 = jnp.zeros((dim,), jnp.float32)
    Wp = jax.random.normal(ks[2], (dim, n_pieces + 1), jnp.float32)  # FSPool
    L1 = s * jax.random.normal(ks[3], (dim, dim), jnp.float32)
    lb1 = jnp.zeros((dim,), jnp.float32)
    L2 = s * jax.random.normal(ks[4], (out_ch, dim), jnp.float32)
    lb2 = jnp.zeros((out_ch,), jnp.float32)
    C1 = s * jax.random.normal(ks[5], (out_ch, out_ch), jnp.float32)
    cb1 = jnp.zeros((out_ch,), jnp.float32)
    C2 = s * jax.random.normal(ks[6], (10, out_ch), jnp.float32)
    cb2 = jnp.zeros((10,), jnp.float32)
    return (W1, b1, W2, b2, Wp, L1, lb1, L2, lb2, C1, cb1, C2, cb2)


if __name__ == "__main__":
    # batch 16 -> TB = 128 // 16 = 8 elements per folded slab, K = 1, 2 grid steps
    B, c_in, N = 16, 4, 16
    dim, out_ch, n_pieces = 32, 16, 20

    key = jax.random.PRNGKey(0)
    kx, kp = jax.random.split(key)
    x = jax.random.normal(kx, (B, c_in, N), jnp.float32)
    params = init_params(kp, c_in, dim, out_ch, n_pieces)

    ref = reference_forward(x, params, n_pieces=n_pieces)

    # f32 MXU path: tight check against the f32 reference.
    prep_f32 = prepare_params(params, N, n_pieces=n_pieces, mxu_dtype=jnp.float32)
    out_f32 = jax.block_until_ready(fs_encoder_forward(x, prep_f32))
    assert out_f32.shape == (B, 10), out_f32.shape
    assert jnp.allclose(out_f32, ref, atol=2e-3, rtol=2e-3), (out_f32, ref)

    # Default bf16 MXU path (f32 accumulation): looser tolerance vs f32 reference.
    prep_bf16 = prepare_params(params, N, n_pieces=n_pieces)   # mxu_dtype=bfloat16
    out_bf16 = jax.block_until_ready(fs_encoder_forward(x, prep_bf16))
    assert out_bf16.shape == (B, 10), out_bf16.shape
    assert jnp.allclose(out_bf16, ref, atol=3e-2, rtol=3e-2), (out_bf16, ref)

    print("KERNEL_OK")
</pallas_src>

<mosaic_0001>
module attributes {stable_mosaic.version = 11 : i64} {
  func.func @kernel(%arg0: i32, %arg1: memref<4x128xf32, #tpu.memory_space<vmem>>, %arg2: memref<32x256xf32, #tpu.memory_space<vmem>>, %arg3: memref<32x2xf32, #tpu.memory_space<vmem>>, %arg4: memref<32x16xf32, #tpu.memory_space<vmem>>, %arg5: memref<32x512xf32, #tpu.memory_space<vmem>>, %arg6: memref<4x128xf32, #tpu.memory_space<vmem>>, %arg7: memref<8x128xf32, #tpu.memory_space<vmem>>, %arg8: memref<8x128xf32, #tpu.memory_space<vmem>>) attributes {dimension_semantics = [#tpu.dimension_semantics<parallel>], iteration_bounds = array<i64: 2>, scalar_prefetch = 0 : i64, scratch_operands = 0 : i64, tpu.core_type = #tpu.core_type<tc>, window_params = [{transform_indices = @transform_0, window_bounds = array<i64: 4, 128>}, {pipeline_mode = #tpu.pipeline_mode<synchronous>, transform_indices = @transform_1, window_bounds = array<i64: 32, 256>}, {pipeline_mode = #tpu.pipeline_mode<synchronous>, transform_indices = @transform_2, window_bounds = array<i64: 32, 2>}, {pipeline_mode = #tpu.pipeline_mode<synchronous>, transform_indices = @transform_3, window_bounds = array<i64: 32, 16>}, {pipeline_mode = #tpu.pipeline_mode<synchronous>, transform_indices = @transform_4, window_bounds = array<i64: 32, 512>}, {pipeline_mode = #tpu.pipeline_mode<synchronous>, transform_indices = @transform_5, window_bounds = array<i64: 4, 128>}, {pipeline_mode = #tpu.pipeline_mode<synchronous>, transform_indices = @transform_6, window_bounds = array<i64: 8, 128>}, {transform_indices = @transform_7, window_bounds = array<i64: 8, 128>}]} {
    %c0 = arith.constant 0 : index
    %c0_0 = arith.constant 0 : index
    %0 = vector.load %arg1[%c0, %c0_0] : memref<4x128xf32, #tpu.memory_space<vmem>>, vector<4x128xf32>
    %c0_1 = arith.constant 0 : index
    %c0_2 = arith.constant 0 : index
    %1 = vector.load %arg2[%c0_1, %c0_2] : memref<32x256xf32, #tpu.memory_space<vmem>>, vector<32x4xf32>
    %c0_3 = arith.constant 0 : index
    %c128 = arith.constant 128 : index
    %2 = vector.load %arg2[%c0_3, %c128] : memref<32x256xf32, #tpu.memory_space<vmem>>, vector<32x32xf32>
    %cst = arith.constant dense<0.000000e+00> : vector<32x128xf32>
    %3 = tpu.matmul %1, %0, %cst {dimension_numbers = #tpu.dot_dimension_numbers<[1], [0], [0], [1], [0, 0, 1, 1], [], []>} : vector<32x4xf32>, vector<4x128xf32>, vector<32x128xf32> -> vector<32x128xf32>
    %c0_4 = arith.constant 0 : index
    %c0_5 = arith.constant 0 : index
    %4 = vector.load %arg3[%c0_4, %c0_5] : memref<32x2xf32, #tpu.memory_space<vmem>>, vector<32x1xf32>
    %5 = vector.broadcast %4 : vector<32x1xf32> to vector<32x128xf32>
    %6 = arith.addf %3, %5 : vector<32x128xf32>
    %cst_6 = arith.constant 0.000000e+00 : f32
    %7 = vector.broadcast %cst_6 : f32 to vector<32x128xf32>
    %8 = arith.maximumf %6, %7 : vector<32x128xf32>
    %cst_7 = arith.constant dense<0.000000e+00> : vector<32x128xf32>
    %9 = tpu.matmul %2, %8, %cst_7 {dimension_numbers = #tpu.dot_dimension_numbers<[1], [0], [0], [1], [0, 0, 1, 1], [], []>} : vector<32x32xf32>, vector<32x128xf32>, vector<32x128xf32> -> vector<32x128xf32>
    %c0_8 = arith.constant 0 : index
    %c1 = arith.constant 1 : index
    %10 = vector.load %arg3[%c0_8, %c1] : memref<32x2xf32, #tpu.memory_space<vmem>>, vector<32x1xf32>
    %11 = vector.broadcast %10 : vector<32x1xf32> to vector<32x128xf32>
    %12 = arith.addf %9, %11 : vector<32x128xf32>
    %13 = tpu.iota {dimensions = array<i32: 1>} : vector<32x128xi32>
    %c16_i32 = arith.constant 16 : i32
    %c0_i32 = arith.constant 0 : i32
    %14 = arith.cmpi eq, %c16_i32, %c0_i32 : i32
    %c1_i32 = arith.constant 1 : i32
    %15 = arith.select %14, %c1_i32, %c16_i32 : i32
    %16 = vector.broadcast %15 : i32 to vector<32x128xi32>
    %17 = arith.remsi %13, %16 : vector<32x128xi32>
    %c0_i32_9 = arith.constant 0 : i32
    %18 = vector.broadcast %c0_i32_9 : i32 to vector<32x128xi32>
    %19 = arith.cmpi ne, %17, %18 : vector<32x128xi32>
    %c0_i32_10 = arith.constant 0 : i32
    %20 = vector.broadcast %c0_i32_10 : i32 to vector<32x128xi32>
    %21 = arith.cmpi slt, %17, %20 : vector<32x128xi32>
    %c0_i32_11 = arith.constant 0 : i32
    %22 = arith.cmpi slt, %15, %c0_i32_11 : i32
    %23 = vector.broadcast %22 : i1 to vector<32x128xi1>
    %24 = vector.broadcast %23 : vector<32x128xi1> to vector<32x128xi1>
    %25 = arith.xori %21, %24 : vector<32x128xi1>
    %26 = arith.andi %25, %19 : vector<32x128xi1>
    %27 = vector.broadcast %15 : i32 to vector<32x128xi32>
    %28 = arith.addi %17, %27 : vector<32x128xi32>
    %29 = arith.select %26, %28, %17 : vector<32x128xi1>, vector<32x128xi32>
    %c1_i32_12 = arith.constant 1 : i32
    %30 = vector.broadcast %c1_i32_12 : i32 to vector<32x128xi32>
    %31 = arith.cmpi sge, %29, %30 : vector<32x128xi32>
    %c2_i32 = arith.constant 2 : i32
    %32 = vector.broadcast %c2_i32 : i32 to vector<32x128xi32>
    %33 = arith.cmpi sge, %29, %32 : vector<32x128xi32>
    %c3_i32 = arith.constant 3 : i32
    %34 = vector.broadcast %c3_i32 : i32 to vector<32x128xi32>
    %35 = arith.cmpi sge, %29, %34 : vector<32x128xi32>
    %c4_i32 = arith.constant 4 : i32
    %36 = vector.broadcast %c4_i32 : i32 to vector<32x128xi32>
    %37 = arith.cmpi sge, %29, %36 : vector<32x128xi32>
    %c5_i32 = arith.constant 5 : i32
    %38 = vector.broadcast %c5_i32 : i32 to vector<32x128xi32>
    %39 = arith.cmpi sge, %29, %38 : vector<32x128xi32>
    %c6_i32 = arith.constant 6 : i32
    %40 = vector.broadcast %c6_i32 : i32 to vector<32x128xi32>
    %41 = arith.cmpi sge, %29, %40 : vector<32x128xi32>
    %c7_i32 = arith.constant 7 : i32
    %42 = vector.broadcast %c7_i32 : i32 to vector<32x128xi32>
    %43 = arith.cmpi sge, %29, %42 : vector<32x128xi32>
    %c8_i32 = arith.constant 8 : i32
    %44 = vector.broadcast %c8_i32 : i32 to vector<32x128xi32>
    %45 = arith.cmpi sge, %29, %44 : vector<32x128xi32>
    %c9_i32 = arith.constant 9 : i32
    %46 = vector.broadcast %c9_i32 : i32 to vector<32x128xi32>
    %47 = arith.cmpi sge, %29, %46 : vector<32x128xi32>
    %c10_i32 = arith.constant 10 : i32
    %48 = vector.broadcast %c10_i32 : i32 to vector<32x128xi32>
    %49 = arith.cmpi sge, %29, %48 : vector<32x128xi32>
    %c11_i32 = arith.constant 11 : i32
    %50 = vector.broadcast %c11_i32 : i32 to vector<32x128xi32>
    %51 = arith.cmpi sge, %29, %50 : vector<32x128xi32>
    %c12_i32 = arith.constant 12 : i32
    %52 = vector.broadcast %c12_i32 : i32 to vector<32x128xi32>
    %53 = arith.cmpi sge, %29, %52 : vector<32x128xi32>
    %c13_i32 = arith.constant 13 : i32
    %54 = vector.broadcast %c13_i32 : i32 to vector<32x128xi32>
    %55 = arith.cmpi sge, %29, %54 : vector<32x128xi32>
    %c14_i32 = arith.constant 14 : i32
    %56 = vector.broadcast %c14_i32 : i32 to vector<32x128xi32>
    %57 = arith.cmpi sge, %29, %56 : vector<32x128xi32>
    %c15_i32 = arith.constant 15 : i32
    %58 = vector.broadcast %c15_i32 : i32 to vector<32x128xi32>
    %59 = arith.cmpi sge, %29, %58 : vector<32x128xi32>
    %c0_13 = arith.constant 0 : index
    %c0_14 = arith.constant 0 : index
    %60 = vector.load %arg4[%c0_13, %c0_14] : memref<32x16xf32, #tpu.memory_space<vmem>>, vector<32x16xf32>
    %cst_15 = arith.constant 0.000000e+00 : f32
    %61 = vector.broadcast %cst_15 : f32 to vector<32x128xf32>
    %c1_i32_16 = arith.constant 1 : i32
    %62 = tpu.dynamic_rotate %12 by %c1_i32_16 dim 1 : vector<32x128xf32>, i32 -> vector<32x128xf32>
    %c113_i32 = arith.constant 113 : i32
    %63 = tpu.dynamic_rotate %12 by %c113_i32 dim 1 : vector<32x128xf32>, i32 -> vector<32x128xf32>
    %64 = arith.select %31, %62, %63 : vector<32x128xi1>, vector<32x128xf32>
    %65 = arith.cmpf ogt, %64, %12 : vector<32x128xf32>
    %66 = arith.cmpf oeq, %64, %12 : vector<32x128xf32>
    %67 = arith.andi %66, %31 : vector<32x128xi1>
    %68 = arith.ori %65, %67 : vector<32x128xi1>
    %69 = arith.extui %68 : vector<32x128xi1> to vector<32x128xi32>
    %70 = arith.sitofp %69 : vector<32x128xi32> to vector<32x128xf32>
    %71 = arith.addf %61, %70 : vector<32x128xf32>
    %c2_i32_17 = arith.constant 2 : i32
    %72 = tpu.dynamic_rotate %12 by %c2_i32_17 dim 1 : vector<32x128xf32>, i32 -> vector<32x128xf32>
    %c114_i32 = arith.constant 114 : i32
    %73 = tpu.dynamic_rotate %12 by %c114_i32 dim 1 : vector<32x128xf32>, i32 -> vector<32x128xf32>
    %74 = arith.select %33, %72, %73 : vector<32x128xi1>, vector<32x128xf32>
    %75 = arith.cmpf ogt, %74, %12 : vector<32x128xf32>
    %76 = arith.cmpf oeq, %74, %12 : vector<32x128xf32>
    %77 = arith.andi %76, %33 : vector<32x128xi1>
    %78 = arith.ori %75, %77 : vector<32x128xi1>
    %79 = arith.extui %78 : vector<32x128xi1> to vector<32x128xi32>
    %80 = arith.sitofp %79 : vector<32x128xi32> to vector<32x128xf32>
    %81 = arith.addf %71, %80 : vector<32x128xf32>
    %c3_i32_18 = arith.constant 3 : i32
    %82 = tpu.dynamic_rotate %12 by %c3_i32_18 dim 1 : vector<32x128xf32>, i32 -> vector<32x128xf32>
    %c115_i32 = arith.constant 115 : i32
    %83 = tpu.dynamic_rotate %12 by %c115_i32 dim 1 : vector<32x128xf32>, i32 -> vector<32x128xf32>
    %84 = arith.select %35, %82, %83 : vector<32x128xi1>, vector<32x128xf32>
    %85 = arith.cmpf ogt, %84, %12 : vector<32x128xf32>
    %86 = arith.cmpf oeq, %84, %12 : vector<32x128xf32>
    %87 = arith.andi %86, %35 : vector<32x128xi1>
    %88 = arith.ori %85, %87 : vector<32x128xi1>
    %89 = arith.extui %88 : vector<32x128xi1> to vector<32x128xi32>
    %90 = arith.sitofp %89 : vector<32x128xi32> to vector<32x128xf32>
    %91 = arith.addf %81, %90 : vector<32x128xf32>
    %c4_i32_19 = arith.constant 4 : i32
    %92 = tpu.dynamic_rotate %12 by %c4_i32_19 dim 1 : vector<32x128xf32>, i32 -> vector<32x128xf32>
    %c116_i32 = arith.constant 116 : i32
    %93 = tpu.dynamic_rotate %12 by %c116_i32 dim 1 : vector<32x128xf32>, i32 -> vector<32x128xf32>
    %94 = arith.select %37, %92, %93 : vector<32x128xi1>, vector<32x128xf32>
    %95 = arith.cmpf ogt, %94, %12 : vector<32x128xf32>
    %96 = arith.cmpf oeq, %94, %12 : vector<32x128xf32>
    %97 = arith.andi %96, %37 : vector<32x128xi1>
    %98 = arith.ori %95, %97 : vector<32x128xi1>
    %99 = arith.extui %98 : vector<32x128xi1> to vector<32x128xi32>
    %100 = arith.sitofp %99 : vector<32x128xi32> to vector<32x128xf32>
    %101 = arith.addf %91, %100 : vector<32x128xf32>
    %c5_i32_20 = arith.constant 5 : i32
    %102 = tpu.dynamic_rotate %12 by %c5_i32_20 dim 1 : vector<32x128xf32>, i32 -> vector<32x128xf32>
    %c117_i32 = arith.constant 117 : i32
    %103 = tpu.dynamic_rotate %12 by %c117_i32 dim 1 : vector<32x128xf32>, i32 -> vector<32x128xf32>
    %104 = arith.select %39, %102, %103 : vector<32x128xi1>, vector<32x128xf32>
    %105 = arith.cmpf ogt, %104, %12 : vector<32x128xf32>
    %106 = arith.cmpf oeq, %104, %12 : vector<32x128xf32>
    %107 = arith.andi %106, %39 : vector<32x128xi1>
    %108 = arith.ori %105, %107 : vector<32x128xi1>
    %109 = arith.extui %108 : vector<32x128xi1> to vector<32x128xi32>
    %110 = arith.sitofp %109 : vector<32x128xi32> to vector<32x128xf32>
    %111 = arith.addf %101, %110 : vector<32x128xf32>
    %c6_i32_21 = arith.constant 6 : i32
    %112 = tpu.dynamic_rotate %12 by %c6_i32_21 dim 1 : vector<32x128xf32>, i32 -> vector<32x128xf32>
    %c118_i32 = arith.constant 118 : i32
    %113 = tpu.dynamic_rotate %12 by %c118_i32 dim 1 : vector<32x128xf32>, i32 -> vector<32x128xf32>
    %114 = arith.select %41, %112, %113 : vector<32x128xi1>, vector<32x128xf32>
    %115 = arith.cmpf ogt, %114, %12 : vector<32x128xf32>
    %116 = arith.cmpf oeq, %114, %12 : vector<32x128xf32>
    %117 = arith.andi %116, %41 : vector<32x128xi1>
    %118 = arith.ori %115, %117 : vector<32x128xi1>
    %119 = arith.extui %118 : vector<32x128xi1> to vector<32x128xi32>
    %120 = arith.sitofp %119 : vector<32x128xi32> to vector<32x128xf32>
    %121 = arith.addf %111, %120 : vector<32x128xf32>
    %c7_i32_22 = arith.constant 7 : i32
    %122 = tpu.dynamic_rotate %12 by %c7_i32_22 dim 1 : vector<32x128xf32>, i32 -> vector<32x128xf32>
    %c119_i32 = arith.constant 119 : i32
    %123 = tpu.dynamic_rotate %12 by %c119_i32 dim 1 : vector<32x128xf32>, i32 -> vector<32x128xf32>
    %124 = arith.select %43, %122, %123 : vector<32x128xi1>, vector<32x128xf32>
    %125 = arith.cmpf ogt, %124, %12 : vector<32x128xf32>
    %126 = arith.cmpf oeq, %124, %12 : vector<32x128xf32>
    %127 = arith.andi %126, %43 : vector<32x128xi1>
    %128 = arith.ori %125, %127 : vector<32x128xi1>
    %129 = arith.extui %128 : vector<32x128xi1> to vector<32x128xi32>
    %130 = arith.sitofp %129 : vector<32x128xi32> to vector<32x128xf32>
    %131 = arith.addf %121, %130 : vector<32x128xf32>
    %c8_i32_23 = arith.constant 8 : i32
    %132 = tpu.dynamic_rotate %12 by %c8_i32_23 dim 1 : vector<32x128xf32>, i32 -> vector<32x128xf32>
    %c120_i32 = arith.constant 120 : i32
    %133 = tpu.dynamic_rotate %12 by %c120_i32 dim 1 : vector<32x128xf32>, i32 -> vector<32x128xf32>
    %134 = arith.select %45, %132, %133 : vector<32x128xi1>, vector<32x128xf32>
    %135 = arith.cmpf ogt, %134, %12 : vector<32x128xf32>
    %136 = arith.cmpf oeq, %134, %12 : vector<32x128xf32>
    %137 = arith.andi %136, %45 : vector<32x128xi1>
    %138 = arith.ori %135, %137 : vector<32x128xi1>
    %139 = arith.extui %138 : vector<32x128xi1> to vector<32x128xi32>
    %140 = arith.sitofp %139 : vector<32x128xi32> to vector<32x128xf32>
    %141 = arith.addf %131, %140 : vector<32x128xf32>
    %c9_i32_24 = arith.constant 9 : i32
    %142 = tpu.dynamic_rotate %12 by %c9_i32_24 dim 1 : vector<32x128xf32>, i32 -> vector<32x128xf32>
    %c121_i32 = arith.constant 121 : i32
    %143 = tpu.dynamic_rotate %12 by %c121_i32 dim 1 : vector<32x128xf32>, i32 -> vector<32x128xf32>
    %144 = arith.select %47, %142, %143 : vector<32x128xi1>, vector<32x128xf32>
    %145 = arith.cmpf ogt, %144, %12 : vector<32x128xf32>
    %146 = arith.cmpf oeq, %144, %12 : vector<32x128xf32>
    %147 = arith.andi %146, %47 : vector<32x128xi1>
    %148 = arith.ori %145, %147 : vector<32x128xi1>
    %149 = arith.extui %148 : vector<32x128xi1> to vector<32x128xi32>
    %150 = arith.sitofp %149 : vector<32x128xi32> to vector<32x128xf32>
    %151 = arith.addf %141, %150 : vector<32x128xf32>
    %c10_i32_25 = arith.constant 10 : i32
    %152 = tpu.dynamic_rotate %12 by %c10_i32_25 dim 1 : vector<32x128xf32>, i32 -> vector<32x128xf32>
    %c122_i32 = arith.constant 122 : i32
    %153 = tpu.dynamic_rotate %12 by %c122_i32 dim 1 : vector<32x128xf32>, i32 -> vector<32x128xf32>
    %154 = arith.select %49, %152, %153 : vector<32x128xi1>, vector<32x128xf32>
    %155 = arith.cmpf ogt, %154, %12 : vector<32x128xf32>
    %156 = arith.cmpf oeq, %154, %12 : vector<32x128xf32>
    %157 = arith.andi %156, %49 : vector<32x128xi1>
    %158 = arith.ori %155, %157 : vector<32x128xi1>
    %159 = arith.extui %158 : vector<32x128xi1> to vector<32x128xi32>
    %160 = arith.sitofp %159 : vector<32x128xi32> to vector<32x128xf32>
    %161 = arith.addf %151, %160 : vector<32x128xf32>
    %c11_i32_26 = arith.constant 11 : i32
    %162 = tpu.dynamic_rotate %12 by %c11_i32_26 dim 1 : vector<32x128xf32>, i32 -> vector<32x128xf32>
    %c123_i32 = arith.constant 123 : i32
    %163 = tpu.dynamic_rotate %12 by %c123_i32 dim 1 : vector<32x128xf32>, i32 -> vector<32x128xf32>
    %164 = arith.select %51, %162, %163 : vector<32x128xi1>, vector<32x128xf32>
    %165 = arith.cmpf ogt, %164, %12 : vector<32x128xf32>
    %166 = arith.cmpf oeq, %164, %12 : vector<32x128xf32>
    %167 = arith.andi %166, %51 : vector<32x128xi1>
    %168 = arith.ori %165, %167 : vector<32x128xi1>
    %169 = arith.extui %168 : vector<32x128xi1> to vector<32x128xi32>
    %170 = arith.sitofp %169 : vector<32x128xi32> to vector<32x128xf32>
    %171 = arith.addf %161, %170 : vector<32x128xf32>
    %c12_i32_27 = arith.constant 12 : i32
    %172 = tpu.dynamic_rotate %12 by %c12_i32_27 dim 1 : vector<32x128xf32>, i32 -> vector<32x128xf32>
    %c124_i32 = arith.constant 124 : i32
    %173 = tpu.dynamic_rotate %12 by %c124_i32 dim 1 : vector<32x128xf32>, i32 -> vector<32x128xf32>
    %174 = arith.select %53, %172, %173 : vector<32x128xi1>, vector<32x128xf32>
    %175 = arith.cmpf ogt, %174, %12 : vector<32x128xf32>
    %176 = arith.cmpf oeq, %174, %12 : vector<32x128xf32>
    %177 = arith.andi %176, %53 : vector<32x128xi1>
    %178 = arith.ori %175, %177 : vector<32x128xi1>
    %179 = arith.extui %178 : vector<32x128xi1> to vector<32x128xi32>
    %180 = arith.sitofp %179 : vector<32x128xi32> to vector<32x128xf32>
    %181 = arith.addf %171, %180 : vector<32x128xf32>
    %c13_i32_28 = arith.constant 13 : i32
    %182 = tpu.dynamic_rotate %12 by %c13_i32_28 dim 1 : vector<32x128xf32>, i32 -> vector<32x128xf32>
    %c125_i32 = arith.constant 125 : i32
    %183 = tpu.dynamic_rotate %12 by %c125_i32 dim 1 : vector<32x128xf32>, i32 -> vector<32x128xf32>
    %184 = arith.select %55, %182, %183 : vector<32x128xi1>, vector<32x128xf32>
    %185 = arith.cmpf ogt, %184, %12 : vector<32x128xf32>
    %186 = arith.cmpf oeq, %184, %12 : vector<32x128xf32>
    %187 = arith.andi %186, %55 : vector<32x128xi1>
    %188 = arith.ori %185, %187 : vector<32x128xi1>
    %189 = arith.extui %188 : vector<32x128xi1> to vector<32x128xi32>
    %190 = arith.sitofp %189 : vector<32x128xi32> to vector<32x128xf32>
    %191 = arith.addf %181, %190 : vector<32x128xf32>
    %c14_i32_29 = arith.constant 14 : i32
    %192 = tpu.dynamic_rotate %12 by %c14_i32_29 dim 1 : vector<32x128xf32>, i32 -> vector<32x128xf32>
    %c126_i32 = arith.constant 126 : i32
    %193 = tpu.dynamic_rotate %12 by %c126_i32 dim 1 : vector<32x128xf32>, i32 -> vector<32x128xf32>
    %194 = arith.select %57, %192, %193 : vector<32x128xi1>, vector<32x128xf32>
    %195 = arith.cmpf ogt, %194, %12 : vector<32x128xf32>
    %196 = arith.cmpf oeq, %194, %12 : vector<32x128xf32>
    %197 = arith.andi %196, %57 : vector<32x128xi1>
    %198 = arith.ori %195, %197 : vector<32x128xi1>
    %199 = arith.extui %198 : vector<32x128xi1> to vector<32x128xi32>
    %200 = arith.sitofp %199 : vector<32x128xi32> to vector<32x128xf32>
    %201 = arith.addf %191, %200 : vector<32x128xf32>
    %c15_i32_30 = arith.constant 15 : i32
    %202 = tpu.dynamic_rotate %12 by %c15_i32_30 dim 1 : vector<32x128xf32>, i32 -> vector<32x128xf32>
    %c127_i32 = arith.constant 127 : i32
    %203 = tpu.dynamic_rotate %12 by %c127_i32 dim 1 : vector<32x128xf32>, i32 -> vector<32x128xf32>
    %204 = arith.select %59, %202, %203 : vector<32x128xi1>, vector<32x128xf32>
    %205 = arith.cmpf ogt, %204, %12 : vector<32x128xf32>
    %206 = arith.cmpf oeq, %204, %12 : vector<32x128xf32>
    %207 = arith.andi %206, %59 : vector<32x128xi1>
    %208 = arith.ori %205, %207 : vector<32x128xi1>
    %209 = arith.extui %208 : vector<32x128xi1> to vector<32x128xi32>
    %210 = arith.sitofp %209 : vector<32x128xi32> to vector<32x128xf32>
    %211 = arith.addf %201, %210 : vector<32x128xf32>
    %cst_31 = arith.constant 0.000000e+00 : f32
    %212 = vector.broadcast %cst_31 : f32 to vector<32x128xf32>
    %213 = arith.cmpf oeq, %211, %212 : vector<32x128xf32>
    %214 = vector.extract_strided_slice %60 {offsets = [0, 0], sizes = [32, 1], strides = [1, 1]} : vector<32x16xf32> to vector<32x1xf32>
    %cst_32 = arith.constant 0.000000e+00 : f32
    %215 = vector.shape_cast %214 : vector<32x1xf32> to vector<32x1xf32>
    %216 = vector.broadcast %215 : vector<32x1xf32> to vector<32x128xf32>
    %217 = vector.broadcast %cst_32 : f32 to vector<32x128xf32>
    %218 = arith.select %213, %216, %217 : vector<32x128xi1>, vector<32x128xf32>
    %cst_33 = arith.constant 1.000000e+00 : f32
    %219 = vector.broadcast %cst_33 : f32 to vector<32x128xf32>
    %220 = arith.cmpf oeq, %211, %219 : vector<32x128xf32>
    %221 = vector.extract_strided_slice %60 {offsets = [0, 1], sizes = [32, 1], strides = [1, 1]} : vector<32x16xf32> to vector<32x1xf32>
    %cst_34 = arith.constant 0.000000e+00 : f32
    %222 = vector.shape_cast %221 : vector<32x1xf32> to vector<32x1xf32>
    %223 = vector.broadcast %222 : vector<32x1xf32> to vector<32x128xf32>
    %224 = vector.broadcast %cst_34 : f32 to vector<32x128xf32>
    %225 = arith.select %220, %223, %224 : vector<32x128xi1>, vector<32x128xf32>
    %226 = arith.addf %218, %225 : vector<32x128xf32>
    %cst_35 = arith.constant 2.000000e+00 : f32
    %227 = vector.broadcast %cst_35 : f32 to vector<32x128xf32>
    %228 = arith.cmpf oeq, %211, %227 : vector<32x128xf32>
    %229 = vector.extract_strided_slice %60 {offsets = [0, 2], sizes = [32, 1], strides = [1, 1]} : vector<32x16xf32> to vector<32x1xf32>
    %cst_36 = arith.constant 0.000000e+00 : f32
    %230 = vector.shape_cast %229 : vector<32x1xf32> to vector<32x1xf32>
    %231 = vector.broadcast %230 : vector<32x1xf32> to vector<32x128xf32>
    %232 = vector.broadcast %cst_36 : f32 to vector<32x128xf32>
    %233 = arith.select %228, %231, %232 : vector<32x128xi1>, vector<32x128xf32>
    %234 = arith.addf %226, %233 : vector<32x128xf32>
    %cst_37 = arith.constant 3.000000e+00 : f32
    %235 = vector.broadcast %cst_37 : f32 to vector<32x128xf32>
    %236 = arith.cmpf oeq, %211, %235 : vector<32x128xf32>
    %237 = vector.extract_strided_slice %60 {offsets = [0, 3], sizes = [32, 1], strides = [1, 1]} : vector<32x16xf32> to vector<32x1xf32>
    %cst_38 = arith.constant 0.000000e+00 : f32
    %238 = vector.shape_cast %237 : vector<32x1xf32> to vector<32x1xf32>
    %239 = vector.broadcast %238 : vector<32x1xf32> to vector<32x128xf32>
    %240 = vector.broadcast %cst_38 : f32 to vector<32x128xf32>
    %241 = arith.select %236, %239, %240 : vector<32x128xi1>, vector<32x128xf32>
    %242 = arith.addf %234, %241 : vector<32x128xf32>
    %cst_39 = arith.constant 4.000000e+00 : f32
    %243 = vector.broadcast %cst_39 : f32 to vector<32x128xf32>
    %244 = arith.cmpf oeq, %211, %243 : vector<32x128xf32>
    %245 = vector.extract_strided_slice %60 {offsets = [0, 4], sizes = [32, 1], strides = [1, 1]} : vector<32x16xf32> to vector<32x1xf32>
    %cst_40 = arith.constant 0.000000e+00 : f32
    %246 = vector.shape_cast %245 : vector<32x1xf32> to vector<32x1xf32>
    %247 = vector.broadcast %246 : vector<32x1xf32> to vector<32x128xf32>
    %248 = vector.broadcast %cst_40 : f32 to vector<32x128xf32>
    %249 = arith.select %244, %247, %248 : vector<32x128xi1>, vector<32x128xf32>
    %250 = arith.addf %242, %249 : vector<32x128xf32>
    %cst_41 = arith.constant 5.000000e+00 : f32
    %251 = vector.broadcast %cst_41 : f32 to vector<32x128xf32>
    %252 = arith.cmpf oeq, %211, %251 : vector<32x128xf32>
    %253 = vector.extract_strided_slice %60 {offsets = [0, 5], sizes = [32, 1], strides = [1, 1]} : vector<32x16xf32> to vector<32x1xf32>
    %cst_42 = arith.constant 0.000000e+00 : f32
    %254 = vector.shape_cast %253 : vector<32x1xf32> to vector<32x1xf32>
    %255 = vector.broadcast %254 : vector<32x1xf32> to vector<32x128xf32>
    %256 = vector.broadcast %cst_42 : f32 to vector<32x128xf32>
    %257 = arith.select %252, %255, %256 : vector<32x128xi1>, vector<32x128xf32>
    %258 = arith.addf %250, %257 : vector<32x128xf32>
    %cst_43 = arith.constant 6.000000e+00 : f32
    %259 = vector.broadcast %cst_43 : f32 to vector<32x128xf32>
    %260 = arith.cmpf oeq, %211, %259 : vector<32x128xf32>
    %261 = vector.extract_strided_slice %60 {offsets = [0, 6], sizes = [32, 1], strides = [1, 1]} : vector<32x16xf32> to vector<32x1xf32>
    %cst_44 = arith.constant 0.000000e+00 : f32
    %262 = vector.shape_cast %261 : vector<32x1xf32> to vector<32x1xf32>
    %263 = vector.broadcast %262 : vector<32x1xf32> to vector<32x128xf32>
    %264 = vector.broadcast %cst_44 : f32 to vector<32x128xf32>
    %265 = arith.select %260, %263, %264 : vector<32x128xi1>, vector<32x128xf32>
    %266 = arith.addf %258, %265 : vector<32x128xf32>
    %cst_45 = arith.constant 7.000000e+00 : f32
    %267 = vector.broadcast %cst_45 : f32 to vector<32x128xf32>
    %268 = arith.cmpf oeq, %211, %267 : vector<32x128xf32>
    %269 = vector.extract_strided_slice %60 {offsets = [0, 7], sizes = [32, 1], strides = [1, 1]} : vector<32x16xf32> to vector<32x1xf32>
    %cst_46 = arith.constant 0.000000e+00 : f32
    %270 = vector.shape_cast %269 : vector<32x1xf32> to vector<32x1xf32>
    %271 = vector.broadcast %270 : vector<32x1xf32> to vector<32x128xf32>
    %272 = vector.broadcast %cst_46 : f32 to vector<32x128xf32>
    %273 = arith.select %268, %271, %272 : vector<32x128xi1>, vector<32x128xf32>
    %274 = arith.addf %266, %273 : vector<32x128xf32>
    %cst_47 = arith.constant 8.000000e+00 : f32
    %275 = vector.broadcast %cst_47 : f32 to vector<32x128xf32>
    %276 = arith.cmpf oeq, %211, %275 : vector<32x128xf32>
    %277 = vector.extract_strided_slice %60 {offsets = [0, 8], sizes = [32, 1], strides = [1, 1]} : vector<32x16xf32> to vector<32x1xf32>
    %cst_48 = arith.constant 0.000000e+00 : f32
    %278 = vector.shape_cast %277 : vector<32x1xf32> to vector<32x1xf32>
    %279 = vector.broadcast %278 : vector<32x1xf32> to vector<32x128xf32>
    %280 = vector.broadcast %cst_48 : f32 to vector<32x128xf32>
    %281 = arith.select %276, %279, %280 : vector<32x128xi1>, vector<32x128xf32>
    %282 = arith.addf %274, %281 : vector<32x128xf32>
    %cst_49 = arith.constant 9.000000e+00 : f32
    %283 = vector.broadcast %cst_49 : f32 to vector<32x128xf32>
    %284 = arith.cmpf oeq, %211, %283 : vector<32x128xf32>
    %285 = vector.extract_strided_slice %60 {offsets = [0, 9], sizes = [32, 1], strides = [1, 1]} : vector<32x16xf32> to vector<32x1xf32>
    %cst_50 = arith.constant 0.000000e+00 : f32
    %286 = vector.shape_cast %285 : vector<32x1xf32> to vector<32x1xf32>
    %287 = vector.broadcast %286 : vector<32x1xf32> to vector<32x128xf32>
    %288 = vector.broadcast %cst_50 : f32 to vector<32x128xf32>
    %289 = arith.select %284, %287, %288 : vector<32x128xi1>, vector<32x128xf32>
    %290 = arith.addf %282, %289 : vector<32x128xf32>
    %cst_51 = arith.constant 1.000000e+01 : f32
    %291 = vector.broadcast %cst_51 : f32 to vector<32x128xf32>
    %292 = arith.cmpf oeq, %211, %291 : vector<32x128xf32>
    %293 = vector.extract_strided_slice %60 {offsets = [0, 10], sizes = [32, 1], strides = [1, 1]} : vector<32x16xf32> to vector<32x1xf32>
    %cst_52 = arith.constant 0.000000e+00 : f32
    %294 = vector.shape_cast %293 : vector<32x1xf32> to vector<32x1xf32>
    %295 = vector.broadcast %294 : vector<32x1xf32> to vector<32x128xf32>
    %296 = vector.broadcast %cst_52 : f32 to vector<32x128xf32>
    %297 = arith.select %292, %295, %296 : vector<32x128xi1>, vector<32x128xf32>
    %298 = arith.addf %290, %297 : vector<32x128xf32>
    %cst_53 = arith.constant 1.100000e+01 : f32
    %299 = vector.broadcast %cst_53 : f32 to vector<32x128xf32>
    %300 = arith.cmpf oeq, %211, %299 : vector<32x128xf32>
    %301 = vector.extract_strided_slice %60 {offsets = [0, 11], sizes = [32, 1], strides = [1, 1]} : vector<32x16xf32> to vector<32x1xf32>
    %cst_54 = arith.constant 0.000000e+00 : f32
    %302 = vector.shape_cast %301 : vector<32x1xf32> to vector<32x1xf32>
    %303 = vector.broadcast %302 : vector<32x1xf32> to vector<32x128xf32>
    %304 = vector.broadcast %cst_54 : f32 to vector<32x128xf32>
    %305 = arith.select %300, %303, %304 : vector<32x128xi1>, vector<32x128xf32>
    %306 = arith.addf %298, %305 : vector<32x128xf32>
    %cst_55 = arith.constant 1.200000e+01 : f32
    %307 = vector.broadcast %cst_55 : f32 to vector<32x128xf32>
    %308 = arith.cmpf oeq, %211, %307 : vector<32x128xf32>
    %309 = vector.extract_strided_slice %60 {offsets = [0, 12], sizes = [32, 1], strides = [1, 1]} : vector<32x16xf32> to vector<32x1xf32>
    %cst_56 = arith.constant 0.000000e+00 : f32
    %310 = vector.shape_cast %309 : vector<32x1xf32> to vector<32x1xf32>
    %311 = vector.broadcast %310 : vector<32x1xf32> to vector<32x128xf32>
    %312 = vector.broadcast %cst_56 : f32 to vector<32x128xf32>
    %313 = arith.select %308, %311, %312 : vector<32x128xi1>, vector<32x128xf32>
    %314 = arith.addf %306, %313 : vector<32x128xf32>
    %cst_57 = arith.constant 1.300000e+01 : f32
    %315 = vector.broadcast %cst_57 : f32 to vector<32x128xf32>
    %316 = arith.cmpf oeq, %211, %315 : vector<32x128xf32>
    %317 = vector.extract_strided_slice %60 {offsets = [0, 13], sizes = [32, 1], strides = [1, 1]} : vector<32x16xf32> to vector<32x1xf32>
    %cst_58 = arith.constant 0.000000e+00 : f32
    %318 = vector.shape_cast %317 : vector<32x1xf32> to vector<32x1xf32>
    %319 = vector.broadcast %318 : vector<32x1xf32> to vector<32x128xf32>
    %320 = vector.broadcast %cst_58 : f32 to vector<32x128xf32>
    %321 = arith.select %316, %319, %320 : vector<32x128xi1>, vector<32x128xf32>
    %322 = arith.addf %314, %321 : vector<32x128xf32>
    %cst_59 = arith.constant 1.400000e+01 : f32
    %323 = vector.broadcast %cst_59 : f32 to vector<32x128xf32>
    %324 = arith.cmpf oeq, %211, %323 : vector<32x128xf32>
    %325 = vector.extract_strided_slice %60 {offsets = [0, 14], sizes = [32, 1], strides = [1, 1]} : vector<32x16xf32> to vector<32x1xf32>
    %cst_60 = arith.constant 0.000000e+00 : f32
    %326 = vector.shape_cast %325 : vector<32x1xf32> to vector<32x1xf32>
    %327 = vector.broadcast %326 : vector<32x1xf32> to vector<32x128xf32>
    %328 = vector.broadcast %cst_60 : f32 to vector<32x128xf32>
    %329 = arith.select %324, %327, %328 : vector<32x128xi1>, vector<32x128xf32>
    %330 = arith.addf %322, %329 : vector<32x128xf32>
    %cst_61 = arith.constant 1.500000e+01 : f32
    %331 = vector.broadcast %cst_61 : f32 to vector<32x128xf32>
    %332 = arith.cmpf oeq, %211, %331 : vector<32x128xf32>
    %333 = vector.extract_strided_slice %60 {offsets = [0, 15], sizes = [32, 1], strides = [1, 1]} : vector<32x16xf32> to vector<32x1xf32>
    %cst_62 = arith.constant 0.000000e+00 : f32
    %334 = vector.shape_cast %333 : vector<32x1xf32> to vector<32x1xf32>
    %335 = vector.broadcast %334 : vector<32x1xf32> to vector<32x128xf32>
    %336 = vector.broadcast %cst_62 : f32 to vector<32x128xf32>
    %337 = arith.select %332, %335, %336 : vector<32x128xi1>, vector<32x128xf32>
    %338 = arith.addf %330, %337 : vector<32x128xf32>
    %339 = arith.mulf %12, %338 : vector<32x128xf32>
    %c0_63 = arith.constant 0 : index
    %c0_64 = arith.constant 0 : index
    %340 = vector.load %arg7[%c0_63, %c0_64] : memref<8x128xf32, #tpu.memory_space<vmem>>, vector<8x128xf32>
    %cst_65 = arith.constant dense<0.000000e+00> : vector<8x32xf32>
    %341 = tpu.matmul %340, %339, %cst_65 {dimension_numbers = #tpu.dot_dimension_numbers<[1], [1], [0], [0], [0, 0, 1, 0], [], []>} : vector<8x128xf32>, vector<32x128xf32>, vector<8x32xf32> -> vector<8x32xf32>
    %c0_66 = arith.constant 0 : index
    %c0_67 = arith.constant 0 : index
    %342 = vector.load %arg5[%c0_66, %c0_67] : memref<32x512xf32, #tpu.memory_space<vmem>>, vector<32x32xf32>
    %c0_68 = arith.constant 0 : index
    %c128_69 = arith.constant 128 : index
    %343 = vector.load %arg5[%c0_68, %c128_69] : memref<32x512xf32, #tpu.memory_space<vmem>>, vector<32x16xf32>
    %c0_70 = arith.constant 0 : index
    %c256 = arith.constant 256 : index
    %344 = vector.load %arg5[%c0_70, %c256] : memref<32x512xf32, #tpu.memory_space<vmem>>, vector<16x16xf32>
    %c0_71 = arith.constant 0 : index
    %c384 = arith.constant 384 : index
    %345 = vector.load %arg5[%c0_71, %c384] : memref<32x512xf32, #tpu.memory_space<vmem>>, vector<16x128xf32>
    %cst_72 = arith.constant dense<0.000000e+00> : vector<8x32xf32>
    %346 = tpu.matmul %341, %342, %cst_72 {dimension_numbers = #tpu.dot_dimension_numbers<[1], [0], [0], [1], [0, 0, 1, 1], [], []>} : vector<8x32xf32>, vector<32x32xf32>, vector<8x32xf32> -> vector<8x32xf32>
    %c0_73 = arith.constant 0 : index
    %c0_74 = arith.constant 0 : index
    %347 = vector.load %arg6[%c0_73, %c0_74] : memref<4x128xf32, #tpu.memory_space<vmem>>, vector<1x32xf32>
    %348 = vector.broadcast %347 : vector<1x32xf32> to vector<8x32xf32>
    %349 = arith.addf %346, %348 : vector<8x32xf32>
    %cst_75 = arith.constant 0.000000e+00 : f32
    %350 = vector.broadcast %cst_75 : f32 to vector<8x32xf32>
    %351 = arith.maximumf %349, %350 : vector<8x32xf32>
    %cst_76 = arith.constant dense<0.000000e+00> : vector<8x16xf32>
    %352 = tpu.matmul %351, %343, %cst_76 {dimension_numbers = #tpu.dot_dimension_numbers<[1], [0], [0], [1], [0, 0, 1, 1], [], []>} : vector<8x32xf32>, vector<32x16xf32>, vector<8x16xf32> -> vector<8x16xf32>
    %c1_77 = arith.constant 1 : index
    %c0_78 = arith.constant 0 : index
    %353 = vector.load %arg6[%c1_77, %c0_78] : memref<4x128xf32, #tpu.memory_space<vmem>>, vector<1x16xf32>
    %354 = vector.broadcast %353 : vector<1x16xf32> to vector<8x16xf32>
    %355 = arith.addf %352, %354 : vector<8x16xf32>
    %cst_79 = arith.constant dense<0.000000e+00> : vector<8x16xf32>
    %356 = tpu.matmul %355, %344, %cst_79 {dimension_numbers = #tpu.dot_dimension_numbers<[1], [0], [0], [1], [0, 0, 1, 1], [], []>} : vector<8x16xf32>, vector<16x16xf32>, vector<8x16xf32> -> vector<8x16xf32>
    %c2 = arith.constant 2 : index
    %c0_80 = arith.constant 0 : index
    %357 = vector.load %arg6[%c2, %c0_80] : memref<4x128xf32, #tpu.memory_space<vmem>>, vector<1x16xf32>
    %358 = vector.broadcast %357 : vector<1x16xf32> to vector<8x16xf32>
    %359 = arith.addf %356, %358 : vector<8x16xf32>
    %cst_81 = arith.constant 0.000000e+00 : f32
    %360 = vector.broadcast %cst_81 : f32 to vector<8x16xf32>
    %361 = arith.maximumf %359, %360 : vector<8x16xf32>
    %cst_82 = arith.constant dense<0.000000e+00> : vector<8x128xf32>
    %362 = tpu.matmul %361, %345, %cst_82 {dimension_numbers = #tpu.dot_dimension_numbers<[1], [0], [0], [1], [0, 0, 1, 1], [], []>} : vector<8x16xf32>, vector<16x128xf32>, vector<8x128xf32> -> vector<8x128xf32>
    %c3 = arith.constant 3 : index
    %c0_83 = arith.constant 0 : index
    %363 = vector.load %arg6[%c3, %c0_83] : memref<4x128xf32, #tpu.memory_space<vmem>>, vector<1x128xf32>
    %364 = vector.broadcast %363 : vector<1x128xf32> to vector<8x128xf32>
    %365 = arith.addf %362, %364 : vector<8x128xf32>
    %c0_84 = arith.constant 0 : index
    %c0_85 = arith.constant 0 : index
    %366 = vector.load %arg8[%c0_84, %c0_85] : memref<8x128xf32, #tpu.memory_space<vmem>>, vector<8x128xf32>
    tpu.vector_store %arg8[%c0_84, %c0_85], %365 {strides = array<i32>} : memref<8x128xf32, #tpu.memory_space<vmem>>, vector<8x128xf32>,
    return
  }
  func.func @transform_0(%arg0: i32) -> (i32, i32) {
    %c0_i32 = arith.constant 0 : i32
    %c0_i32_0 = arith.constant 0 : i32
    return %c0_i32, %arg0 : i32, i32
  }
  func.func @transform_1(%arg0: i32) -> (i32, i32) {
    %c0_i32 = arith.constant 0 : i32
    %c0_i32_0 = arith.constant 0 : i32
    %c0_i32_1 = arith.constant 0 : i32
    return %c0_i32, %c0_i32_0 : i32, i32
  }
  func.func @transform_2(%arg0: i32) -> (i32, i32) {
    %c0_i32 = arith.constant 0 : i32
    %c0_i32_0 = arith.constant 0 : i32
    %c0_i32_1 = arith.constant 0 : i32
    return %c0_i32, %c0_i32_0 : i32, i32
  }
  func.func @transform_3(%arg0: i32) -> (i32, i32) {
    %c0_i32 = arith.constant 0 : i32
    %c0_i32_0 = arith.constant 0 : i32
    %c0_i32_1 = arith.constant 0 : i32
    return %c0_i32, %c0_i32_0 : i32, i32
  }
  func.func @transform_4(%arg0: i32) -> (i32, i32) {
    %c0_i32 = arith.constant 0 : i32
    %c0_i32_0 = arith.constant 0 : i32
    %c0_i32_1 = arith.constant 0 : i32
    return %c0_i32, %c0_i32_0 : i32, i32
  }
  func.func @transform_5(%arg0: i32) -> (i32, i32) {
    %c0_i32 = arith.constant 0 : i32
    %c0_i32_0 = arith.constant 0 : i32
    %c0_i32_1 = arith.constant 0 : i32
    return %c0_i32, %c0_i32_0 : i32, i32
  }
  func.func @transform_6(%arg0: i32) -> (i32, i32) {
    %c0_i32 = arith.constant 0 : i32
    %c0_i32_0 = arith.constant 0 : i32
    %c0_i32_1 = arith.constant 0 : i32
    return %c0_i32, %c0_i32_0 : i32, i32
  }
  func.func @transform_7(%arg0: i32) -> (i32, i32) {
    %c0_i32 = arith.constant 0 : i32
    %c0_i32_0 = arith.constant 0 : i32
    return %arg0, %c0_i32 : i32, i32
  }
}

</mosaic_0001>

<bundles_post_ra>
// kernel: tpu_custom_call.1
= control target key start
LH: loop header
LB: loop body
LE: loop exit
PB: predicated region body
PF: predicated region fallthrough
CT: control target
= control target key end

     0   :  { %12 = vsyncpa [#allocation3], 0  ;;  %s4432_s0 = inlined_call_operand.vmem [shape: f32[4,256], index: 0, kind: input, shape index: {}]   ;;  %s4433_s1 = inlined_call_operand.vmem [shape: f32[32,256], index: 1, kind: input, shape index: {}]   ;;  %s4434_s2 = inlined_call_operand.vmem [shape: f32[32,2], index: 2, kind: input, shape index: {}]   ;;  %s4435_s3 = inlined_call_operand.vmem [shape: f32[32,16], index: 3, kind: input, shape index: {}]   ;;  %s4436_s4 = inlined_call_operand.hbm [shape: f32[32,512], index: 4, kind: input, shape index: {}]   ;;  %s4437_s5 = inlined_call_operand.vmem [shape: f32[4,128], index: 5, kind: input, shape index: {}]   ;;  %s4438_s6 = inlined_call_operand.vmem [shape: f32[8,128], index: 6, kind: input, shape index: {}]   ;;  %s4439_s7 = inlined_call_operand.hbm [shape: f32[16,128], index: 7, kind: output, shape index: {}]  }
   0x1   :  { %13 = vsyncpa [#allocation4], 0 }
   0x2   :  { %15 = vsyncpa [#allocation4 + $0x1], 0  ;;  %s2799_s24 = smov 0   ;;  %s2801_s25 = smov 0  }
   0x3   :  { %s2803_s26 = smov 0   ;;  %s2805_s27 = smov 0  }
   0x4 LB: > { %s2820_s28 = sadd.s32 4294967295, %s2704_s27   ;;  %s2231_s29 = sadd.s32 4294967294, %s2704_s27   ;;  %s2704_s27 = sphi %s2805_s27, %s4722_s27   ;;  %s2700_s26 = sphi %s2803_s26, %s4721_s26   ;;  %s2696_s25 = sphi %s2801_s25, %s4720_s25   ;;  %s2692_s24 = sphi %s2799_s24, %s4719_s24  }
   0x5   : > { %s2824_s30 = sadd.s32 1, %s2704_s27   ;;  %s180_s8 = sadd.s32 1, %s2700_s26 }
   0x6   : > { %s177_s9 = ssub.s32 %s2704_s27, %s2824_s30  ;;  %p190_p0 = scmp.ne.s32.totalorder %s2700_s26, %s2696_s25 }
   0x7   : > { %p178_p1 = scmp.eq.s32.totalorder %s177_s9, 0  ;;  %p191_p2 = scmp.eq.s32.totalorder %s2820_s28, 1 }
   0x8   : > { %p196_p3 = scmp.ne.s32.totalorder %s2696_s25, %s2692_s24  ;;  %p197_p4 = scmp.eq.s32.totalorder %s2231_s29, 1 }
   0x9   : > { %s2835_s10 = scalar_select %p178_p1, %s2700_s26, %s180_s8  }
   0xa   : > { %p2837_p5 = por %p191_p2, %p190_p0  ;;  %p2841_p6 = por %p197_p4, %p196_p3 }
   0xb   : > { %p2232_p7 = scmp.ge.s32.totalorder %s2704_s27, 1  ;;  %p204_p8 = scmp.lt.s32.totalorder %s2704_s27, 3 }
   0xc   : > { %s4502_s11 = scalar_select %p2837_p5, 1, 0 }
   0xd   : > { %s4503_s12 = scalar_select %p2841_p6, 1, 0 }
   0xe   : > { %p4440_p9 = scmp.eq.s32.totalorder %s2820_s28, 0  ;;  %p2848_p10 = pnand %p2232_p7, %p204_p8 }
   0xf   : > { %s2706_s14 = smov [#allocation2]   ;;  %s2610_s19 = scalar_lea.hbm %s4436_s4, 2048 }
  0x10   : > { %s4504_s13 = scalar_select %p2848_p10, 1, 0 }
  0x11   : > { %s225_s15 = sshll.u32 %s2706_s14, 4  ;;  %p2461_p11 = pneg %p2848_p10  ;;  %s226_s15 = int_to_ptr.vmem [resolvable:$true] %s225_s15 }
  0x12   : > { %p2611_p13 = scmp.ne.s32.totalorder %s4436_s4, %s2610_s19  ;;  %p2617_p3 = scmp.lt.u32.totalorder %s2610_s19, %s4436_s4 }
  0x13   : > { %p2856_p12 = pnand %p4440_p9, %p2461_p11 }
  0x15   : > { %p2612_p0 = pneg %p2856_p12 }
  0x17   : > { %p2613_p1 = pnand %p2612_p0, %p2611_p13 }
  0x19   : > { %p2614_p2 = pneg %p2613_p1 }
  0x1b   : > { %p2619_p4 = pnand %p2617_p3, %p2614_p2 }
  0x1d   : > { %2622 = shalt.err (!%p2619_p4)
}
  0x1e   : > { %s2623_s29 = scalar_lea.vmem %s226_s15, 2048  ;;  %p2631_p9 = scmp.lt.s32.totalorder %s226_s15, %s226_s15 }
  0x1f   : > { %p2624_p7 = scmp.ne.s32.totalorder %s226_s15, %s2623_s29  ;;  %p2632_p6 = scmp.lt.s32.totalorder %s2623_s29, %s2623_s29 }
  0x21   : > { %p2626_p8 = pnand %p2624_p7, %p2612_p0  ;;  %p2633_p5 = por %p2632_p6, %p2631_p9 }
  0x23   : > { %p2627_p11 = pneg %p2626_p8 }
  0x25   : > { %p2634_p10 = pnand %p2633_p5, %p2627_p11 }
  0x27   : > { %2637 = shalt.err (!%p2634_p10)
}
  0x28   : > { %s2707_s8 = smov 512   ;;  %s2708_s9 = smov 32  }
  0x29   : > { %2464 = dma.hbm_to_vmem [thread:$0]  (!%p2856_p12), %s4436_s4, 2048, %s226_s15, [#allocation3], %s2707_s8, %s2707_s8, %s2708_s9  }
  0x2a   : > { %p4506_p13 = scmp.ne.s32.totalorder %s4504_s13, 0 }
  0x2c   : > { %254 = sbr.rel (%p4506_p13) target bundleno = 2010 (0x7da), region = 48 }
  0x33   : > { %p4507_p1 = scmp.eq.s32.totalorder %s2820_s28, 0 }
  0x35   : > { %2683 = dma.done.wait (%p4507_p1), [#allocation3], 2048   ;;  %p4508_p0 = pmov %p4507_p1 }
  0x36   : > { %p285_p5 = scmp.lt.s32.totalorder %s2820_s28, 1  ;;  %v2709_v0 = vmov 1   ;;  %v2710_v1 = vmov 0   ;;  %vm335_vm0 = vcmask 1043456   ;;  %vm322_vm1 = vcmask 31744   ;;  %v290_v3 = vld [vmem:[%s4433_s1] sm:$0xff] }
  0x37   : > { %2685 = vsyncadd (%p4508_p0), [#allocation3], 4294965248  ;;  %2557 = vset.pattern.permute.xlu0 %v2709_v0  ;;  %2556 = vset.pattern.permute.xlu1 %v2710_v1  ;;  %v291_v4 = vld [vmem:[%s4433_s1 + $0x10] sm:$0xff]  ;;  %v292_v5 = vld [vmem:[%s4433_s1 + $0x20] sm:$0xff]  ;;  %v2711_v11 = vmov 4   ;;  %vm4480_vm2 = vcmask 261120  }
  0x38   : > { %s286_s16 = scalar_select %p285_p5, %s2820_s28, 1  ;;  %2356 = vmatprep.mubr.msk.f32.mxu0 %vm322_vm1, %v290_v3  ;;  %v298_v6 = vld [vmem:[%s4434_s2] sm:$0xff]  ;;  %v301_v7 = vld [vmem:[%s4434_s2 + $0x18] sm:$0xff]  ;;  %v300_v8 = vld [vmem:[%s4434_s2 + $0x10] sm:$0xff]  ;;  %v2712_v16 = vmov 2   ;;  %v2713_v17 = vmov 3  }
  0x39   : > { %429 = vperm.xlu0 %2557, %v298_v6   ;;  %v293_v9 = vld [vmem:[%s4433_s1 + $0x30] sm:$0xff]  ;;  %314 = vperm.xlu1 %2556, %v300_v8   ;;  %v2916_v10 = vld [vmem:[%s4435_s3] sm:$0xff]  ;;  %v299_v12 = vld [vmem:[%s4434_s2 + $0x8] sm:$0xff]  ;;  %v2714_v19 = vmov 7   ;;  %v2715_v20 = vmov 5   ;;  %v2716_v21 = vmov 6  }
  0x3a   : > { %s2238_s18 = sshll.u32 %s286_s16, 2  ;;  %v2927_v13 = vld [vmem:[%s4435_s3 + $0x8] sm:$0xff]  ;;  %v2934_v14 = vld [vmem:[%s4435_s3 + $0x18] sm:$0xff]  ;;  %v2954_v18 = vld [vmem:[%s4435_s3 + $0x10] sm:$0xff]  ;;  %v2717_v22 = vmov 10   ;;  %v2718_v23 = vmov 8  }
  0x3b   : > { %s288_s13 = scalar_lea.vmem %s4432_s0, %s2238_s18  ;;  %v294_v15 = vld [vmem:[%s4433_s1 + $0x8] sm:$0xff]  ;;  %v2719_v24 = vmov 9   ;;  %v4475_v25 = vmov 14   ;;  %v2721_v26 = vmov 11   ;;  %v4478_v47 = vmov 12   ;;  %v295_v49 = vld [vmem:[%s4433_s1 + $0x18] sm:$0xff] }
  0x3c   : > { %v289_v2 = vld [vmem:[%s288_s13] sm:$0xf]  ;;  %2370 = vmatprep.mubr.msk.f32.mxu1 %vm4480_vm2, %v294_v15  ;;  %v296_v50 = vld [vmem:[%s4433_s1 + $0x28] sm:$0xff]  ;;  %v297_v51 = vld [vmem:[%s4433_s1 + $0x38] sm:$0xff]  ;;  %v4476_v52 = vmov 13   ;;  %s2724_s29 = smov 1  }
  0x3d   : > { %2354 = vmatprep.subr.msk.mxu0 %vm335_vm0, %v289_v2  ;;  %441 = vperm.xlu0 %2557, %v301_v7   ;;  %s2725_s8 = smov 113   ;;  %s2726_s9 = smov 2  }
  0x3e   : > { %2355 = vmatpush3.msk.msra.mxu0 %vm335_vm0, %v289_v2  ;;  %319 = vperm.xlu1 %2556, %v301_v7   ;;  %s2727_s14 = smov 114   ;;  %s2728_s17 = smov 3  }
  0x3f   : > { %2357 = vmatmul.mubr.msk.f32.vlgmr.msra.gmra.mrb[0].mxu0 %vm322_vm1, %v291_v4  ;;  %s2729_s16 = smov 115   ;;  %s2730_s18 = smov 4  }
  0x40   : > { %2359 = vmatprep.mubr.msk.f32.mxu0 %vm322_vm1, %v292_v5  ;;  %s2731_s15 = smov 116   ;;  %s4473_s19 = smov 5  }
  0x41   : > { %2563 = vset.pattern.permute.xlu0 %v2711_v11  ;;  %s4467_s13 = smov 117   ;;  %s4465_s20 = smov 6  }
  0x42   : > { %1412 = vperm.xlu0 %2563, %v2916_v10   ;;  %2558 = vset.pattern.permute.xlu1 %v2709_v0  ;;  %s4443_s21 = smov 118   ;;  %s4445_s22 = smov 7  }
  0x43   : > { %2360 = vmatmul.mubr.msk.f32.gmra.mrb[2].mxu0 %vm322_vm1, %v293_v9  ;;  %433 = vperm.xlu1 %2558, %v299_v12   ;;  %s4447_s23 = smov 119   ;;  %p4717_p9 = scmp.ne.s32.totalorder %s4502_s11, 0 }
  0x46   : > { %2564 = vset.pattern.permute.xlu0 %v2710_v1 }
  0x47   : > { %304 = vperm.xlu0 %2564, %v298_v6   ;;  %437 = vperm.xlu1 %2558, %v300_v8  }
  0x4b   : > { %309 = vperm.xlu0 %2564, %v299_v12   ;;  %2559 = vset.pattern.permute.xlu1 %v2710_v1 }
  0x4c   : > { %1301 = vperm.xlu1 %2559, %v2916_v10  }
  0x4f   : > { %1306 = vperm.xlu0 %2564, %v2927_v13  }
  0x50   : > { %2560 = vset.pattern.permute.xlu1 %v2709_v0 }
  0x51   : > { %1328 = vperm.xlu1 %2560, %v2916_v10  }
  0x53   : > { %1316 = vperm.xlu0 %2564, %v2934_v14  }
  0x55   : > { %1332 = vperm.xlu1 %2560, %v2927_v13  }
  0x57   : > { %2567 = vset.pattern.permute.xlu0 %v2712_v16 }
  0x58   : > { %1356 = vperm.xlu0 %2567, %v2916_v10  }
  0x59   : > { %2561 = vset.pattern.permute.xlu1 %v2712_v16 }
  0x5a   : > { %1360 = vperm.xlu1 %2561, %v2927_v13  }
  0x5c   : > { %1368 = vperm.xlu0 %2567, %v2934_v14  }
  0x5e   : > { %2562 = vset.pattern.permute.xlu1 %v2713_v17 }
  0x5f   : > { %1384 = vperm.xlu1 %2562, %v2916_v10  }
  0x60   : > { %2571 = vset.pattern.permute.xlu0 %v2713_v17 }
  0x61   : > { %1388 = vperm.xlu0 %2571, %v2927_v13  }
  0x63   : > { %2565 = vset.pattern.permute.xlu1 %v2711_v11 }
  0x64   : > { %1416 = vperm.xlu1 %2565, %v2927_v13  }
  0x65   : > { %1392 = vperm.xlu0 %2571, %v2954_v18  }
  0x68   : > { %2566 = vset.pattern.permute.xlu1 %v2710_v1 }
  0x69   : > { %1311 = vperm.xlu1 %2566, %v2954_v18   ;;  %2575 = vset.pattern.permute.xlu0 %v2714_v19 }
  0x6a   : > { %1500 = vperm.xlu0 %2575, %v2927_v13  }
  0x6d   : > { %2568 = vset.pattern.permute.xlu1 %v2709_v0 }
  0x6e   : > { %1336 = vperm.xlu1 %2568, %v2954_v18   ;;  %2576 = vset.pattern.permute.xlu0 %v2715_v20 }
  0x6f   : > { %1440 = vperm.xlu0 %2576, %v2916_v10  }
  0x72   : > { %1340 = vperm.xlu1 %2568, %v2934_v14  }
  0x73   : > { %1452 = vperm.xlu0 %2576, %v2934_v14  }
  0x76   : > { %2569 = vset.pattern.permute.xlu1 %v2715_v20 }
  0x77   : > { %1444 = vperm.xlu1 %2569, %v2927_v13   ;;  %2581 = vset.pattern.permute.xlu0 %v2716_v21 }
  0x78   : > { %1476 = vperm.xlu0 %2581, %v2954_v18  }
  0x7b   : > { %2570 = vset.pattern.permute.xlu1 %v2712_v16 }
  0x7c   : > { %1364 = vperm.xlu1 %2570, %v2954_v18   ;;  %2584 = vset.pattern.permute.xlu0 %v2717_v22 }
  0x7d   : > { %1584 = vperm.xlu0 %2584, %v2927_v13  }
  0x80   : > { %2572 = vset.pattern.permute.xlu1 %v2716_v21 }
  0x81   : > { %1468 = vperm.xlu1 %2572, %v2916_v10   ;;  %2585 = vset.pattern.permute.xlu0 %v2718_v23 }
  0x82   : > { %1524 = vperm.xlu0 %2585, %v2916_v10  }
  0x85   : > { %1472 = vperm.xlu1 %2572, %v2927_v13  }
  0x86   : > { %1536 = vperm.xlu0 %2585, %v2934_v14  }
  0x89   : > { %2573 = vset.pattern.permute.xlu1 %v2713_v17 }
  0x8a   : > { %1396 = vperm.xlu1 %2573, %v2934_v14   ;;  %2590 = vset.pattern.permute.xlu0 %v2719_v24 }
  0x8b   : > { %1560 = vperm.xlu0 %2590, %v2954_v18  }
  0x8e   : > { %2574 = vset.pattern.permute.xlu1 %v2714_v19 }
  0x8f   : > { %1496 = vperm.xlu1 %2574, %v2916_v10   ;;  %2594 = vset.pattern.permute.xlu0 %v4475_v25 }
  0x90   : > { %1692 = vperm.xlu0 %2594, %v2916_v10  }
  0x93   : > { %2577 = vset.pattern.permute.xlu1 %v2711_v11 }
  0x94   : > { %1420 = vperm.xlu1 %2577, %v2954_v18   ;;  %2595 = vset.pattern.permute.xlu0 %v2721_v26 }
  0x95   : > { %1608 = vperm.xlu0 %2595, %v2916_v10  }
  0x98   : > { %1424 = vperm.xlu1 %2577, %v2934_v14  }
  0x9c   : > { %2578 = vset.pattern.permute.xlu1 %v2718_v23 }
  0x9d   : > { %1528 = vperm.xlu1 %2578, %v2927_v13  }
  0xa1   : > { %2579 = vset.pattern.permute.xlu1 %v2715_v20 }
  0xa2   : > { %1448 = vperm.xlu1 %2579, %v2954_v18  }
  0xa6   : > { %2580 = vset.pattern.permute.xlu1 %v2719_v24 }
  0xa7   : > { %1552 = vperm.xlu1 %2580, %v2916_v10  }
  0xab   : > { %1556 = vperm.xlu1 %2580, %v2927_v13  }
  0xaf   : > { %2582 = vset.pattern.permute.xlu1 %v2716_v21 }
  0xb0   : > { %1480 = vperm.xlu1 %2582, %v2934_v14  }
  0xb4   : > { %2583 = vset.pattern.permute.xlu1 %v2717_v22 }
  0xb5   : > { %1580 = vperm.xlu1 %2583, %v2916_v10  }
  0xb8   : > { %v2989_v27 = vpop.permute.xlu0 %429  ;;  %v315_v31 = vpop.permute.xlu1 %314 }
  0xb9   : > { %2586 = vset.pattern.permute.xlu1 %v2714_v19 }
  0xba   : > { %1504 = vperm.xlu1 %2586, %v2954_v18  }
  0xbc   : > { %v2992_v28 = vpop.permute.xlu0 %441 }
  0xbd   : > { %v320_v38 = vpop.permute.xlu1 %319 }
  0xbe   : > { %1508 = vperm.xlu1 %2586, %v2934_v14  }
  0xc1   : > { %v2996_v29 = vpop.permute.xlu0 %1412 }
  0xc2   : > { %2587 = vset.pattern.permute.xlu1 %v2721_v26  ;;  %v434_v53 = vpop.permute.xlu1 %433 }
  0xc3   : > { %1612 = vperm.xlu1 %2587, %v2927_v13  }
  0xc6   : > { %v305_v30 = vpop.permute.xlu0 %304  ;;  %v3028_v54 = vpop.permute.xlu1 %437 }
  0xc7   : > { %2588 = vset.pattern.permute.xlu1 %v2718_v23 }
  0xc8   : > { %1532 = vperm.xlu1 %2588, %v2954_v18  }
  0xca   : > { %v310_v32 = vpop.permute.xlu0 %309 }
  0xcb   : > { %v3030_v55 = vpop.permute.xlu1 %1301 }
  0xcc   : > { %2589 = vset.pattern.permute.xlu1 %v4478_v47 }
  0xcd   : > { %1636 = vperm.xlu1 %2589, %v2916_v10  }
  0xce   : > { %v3097_v16 = vpop.permute.xlu0 %1306 }
  0xd0   : > { %v3032_v56 = vpop.permute.xlu1 %1328 }
  0xd1   : > { %1640 = vperm.xlu1 %2589, %v2927_v13  }
  0xd4   : > { %v3034_v57 = vpop.permute.xlu1 %1332 }
  0xd5   : > { %2591 = vset.pattern.permute.xlu1 %v2719_v24 }
  0xd6   : > { %1564 = vperm.xlu1 %2591, %v2934_v14  }
  0xd9   : > { %v3036_v58 = vpop.permute.xlu1 %1360 }
  0xda   : > { %2592 = vset.pattern.permute.xlu1 %v4476_v52 }
  0xdb   : > { %1664 = vperm.xlu1 %2592, %v2916_v10  }
  0xde   : > { %v3038_v59 = vpop.permute.xlu1 %1384 }
  0xdf   : > { %2593 = vset.pattern.permute.xlu1 %v2717_v22 }
  0xe0   : > { %1588 = vperm.xlu1 %2593, %v2954_v18   ;;  %v3109_v18 = vpop.permute.xlu0 %1316 }
  0xe3   : > { %v3040_v60 = vpop.permute.xlu1 %1416 }
  0xe4   : > { %1592 = vperm.xlu1 %2593, %v2934_v14   ;;  %v3115_v19 = vpop.permute.xlu0 %1356 }
  0xe8   : > { %2596 = vset.pattern.permute.xlu1 %v4475_v25  ;;  %v3042_v61 = vpop.permute.xlu1 %1311  ;;  %v3125_v21 = vpop.permute.xlu0 %1368 }
  0xe9   : > { %1696 = vperm.xlu1 %2596, %v2927_v13  }
  0xec   : > { %v3135_v23 = vpop.permute.xlu0 %1388 }
  0xed   : > { %2597 = vset.pattern.permute.xlu1 %v2721_v26  ;;  %v3044_v62 = vpop.permute.xlu1 %1336 }
  0xf0   : > { %v3145_v26 = vpop.permute.xlu0 %1392 }
  0xf1   : > { %v3046_v63 = vpop.permute.xlu1 %1340 }
  0xf6   : > { %v3048_v0 = vpop.permute.xlu1 %1444 }
  0xfb   : > { %v3050_v1 = vpop.permute.xlu1 %1364 }
 0x100   : > { %v3052_v2 = vpop.permute.xlu1 %1468 }
 0x104   : > { %v3054_v3 = vpop.permute.xlu1 %1472 }
 0x109   : > { %v3056_v4 = vpop.permute.xlu1 %1396 }
 0x10e   : > { %v3058_v6 = vpop.permute.xlu1 %1496 }
 0x112   : > { %v2358_v33 = vpop.f32.mrb[0].mxu0 }
 0x113   : > { %v411_v34 = vadd.f32 %v2358_v33, %v310_v32  ;;  %v405_v35 = vpop.f32.mrb[1].mxu0  ;;  %v3073_v12 = vpop.permute.xlu1 %1420 }
 0x114   : > { %v406_v36 = vadd.f32 %v405_v35, %v305_v30  ;;  %4511 = vst [vmem:[#allocation10_spill] sm:$0xff] %v3073_v12  ;;  %v3155_v30 = vpop.permute.xlu0 %1500 }
 0x115   : > { %v425_v37 = vmax.f32 %v411_v34, 0.0 }
 0x116   : > { %v424_v39 = vmax.f32 %v406_v36, 0.0  ;;  %v2361_v40 = vpop.f32.mrb[2].mxu0 }
 0x117   : > { %v421_v41 = vadd.f32 %v2361_v40, %v320_v38  ;;  %v415_v42 = vpop.f32.mrb[3].mxu0  ;;  %v3083_v13 = vpop.permute.xlu1 %1424 }
 0x118   : > { %v416_v43 = vadd.f32 %v415_v42, %v315_v31  ;;  %v2423_v44 = vpack.c.bf16 %v425_v37, %v424_v39  ;;  %v3165_v32 = vpop.permute.xlu0 %1440 }
 0x119   : > { %v427_v45 = vmax.f32 %v421_v41, 0.0 }
 0x11a   : > { %v426_v46 = vmax.f32 %v416_v43, 0.0  ;;  %2424 = vmatprep.subr.bf16.mxu1 %v2423_v44 }
 0x11b   : > { %2426 = vmatpush3.bf16.msra.mxu1 %v2423_v44 }
 0x11c   : > { %v2427_v48 = vpack.c.bf16 %v427_v45, %v426_v46  ;;  %v3089_v14 = vpop.permute.xlu1 %1528  ;;  %v3175_v34 = vpop.permute.xlu0 %1452 }
 0x11d   : > { %4516 = vst [vmem:[#allocation15_spill] sm:$0xff] %v3175_v34 }
 0x11e   : > { %2428 = vmatprep.subr.bf16.mxu1 %v2427_v48 }
 0x11f   : > { %2430 = vmatpush3.bf16.msra.mxu1 %v2427_v48 }
 0x120   : > { %v3185_v36 = vpop.permute.xlu0 %1476 }
 0x121   : > { %v3095_v15 = vpop.permute.xlu1 %1448  ;;  %4518 = vst [vmem:[#allocation17_spill] sm:$0xff] %v3185_v36 }
 0x122   : > { %2371 = vmatmul.mubr.msk.f32.vlgmr.msra.gmra.mrb[0].mxu1 %vm4480_vm2, %v295_v49  ;;  %4512 = vst [vmem:[#allocation11_spill] sm:$0xff] %v3095_v15 }
 0x123   : > { %2373 = vmatprep.mubr.msk.f32.mxu1 %vm4480_vm2, %v296_v50 }
 0x124   : > { %v3195_v38 = vpop.permute.xlu0 %1584 }
 0x126   : > { %2374 = vmatmul.mubr.msk.f32.gmra.mrb[2].mxu1 %vm4480_vm2, %v297_v51  ;;  %v3107_v17 = vpop.permute.xlu1 %1552 }
 0x128   : > { %v3205_v40 = vpop.permute.xlu0 %1524 }
 0x12a   : > { %v3117_v20 = vpop.permute.xlu1 %1556 }
 0x12c   : > { %v3215_v42 = vpop.permute.xlu0 %1536 }
 0x12d   : > { %4522 = vst [vmem:[#allocation21_spill] sm:$0xff] %v3215_v42 }
 0x12f   : > { %v3129_v22 = vpop.permute.xlu1 %1480 }
 0x130   : > { %4513 = vst [vmem:[#allocation12_spill] sm:$0xff] %v3129_v22  ;;  %v3225_v44 = vpop.permute.xlu0 %1560 }
 0x131   : > { %4524 = vst [vmem:[#allocation23_spill] sm:$0xff] %v3225_v44 }
 0x134   : > { %v3137_v24 = vpop.permute.xlu1 %1580  ;;  %v3235_v46 = vpop.permute.xlu0 %1692 }
 0x135   : > { %4526 = vst [vmem:[#allocation25_spill] sm:$0xff] %v3235_v46 }
 0x138   : > { %v3245_v49 = vpop.permute.xlu0 %1608 }
 0x1f5   : > { %v2372_v5 = vpop.f32.mrb[0].mxu1 }
 0x1f6   : > { %v3060_v7 = vadd.f32 %v2372_v5, %v434_v53  ;;  %v523_v8 = vpop.f32.mrb[1].mxu1 }
 0x1f7   : > { %v3063_v9 = vadd.f32 %v523_v8, %v2989_v27  ;;  %v3149_v27 = vpop.permute.xlu1 %1504 }
 0x1f8   : > { %4509 = vst [vmem:[#allocation8_spill] sm:$0xff] %v3060_v7  ;;  %577 = vrot.lane.b32.xlu0 %v3060_v7, %s2724_s29  ;;  %4514 = vst [vmem:[#allocation13_spill] sm:$0xff] %v3149_v27 }
 0x1f9   : > { %4510 = vst [vmem:[#allocation9_spill] sm:$0xff] %v3063_v9  ;;  %v3067_v10 = vpop.f32.mrb[2].mxu1  ;;  %575 = vrot.lane.b32.xlu1 %v3063_v9, %s2724_s29 }
 0x1fa   : > { %v3071_v11 = vpop.f32.mrb[3].mxu1  ;;  %v3263_v5 = vadd.f32 %v3067_v10, %v2992_v28 }
 0x1fb   : > { %v3157_v31 = vpop.permute.xlu1 %1508  ;;  %v3289_v44 = vadd.f32 %v3071_v11, %v3028_v54 }
 0x1fc   : > { %585 = vrot.lane.b32.xlu0 %v3060_v7, %s2725_s8  ;;  %4515 = vst [vmem:[#allocation14_spill] sm:$0xff] %v3157_v31  ;;  %v542_v31 = vlaneseq }
 0x1fd   : > { %583 = vrot.lane.b32.xlu1 %v3063_v9, %s2725_s8 }
 0x1fe   : > { %v543_v46 = vand.u32 127, %v542_v31 }
 0x1ff   : > { %v3169_v33 = vpop.permute.xlu1 %1612 }
 0x200   : > { %625 = vrot.lane.b32.xlu0 %v3060_v7, %s2726_s9 }
 0x201   : > { %623 = vrot.lane.b32.xlu1 %v3063_v9, %s2726_s9 }
 0x203   : > { %v3177_v35 = vpop.permute.xlu1 %1532 }
 0x204   : > { %633 = vrot.lane.b32.xlu0 %v3060_v7, %s2727_s14  ;;  %4517 = vst [vmem:[#allocation16_spill] sm:$0xff] %v3177_v35 }
 0x205   : > { %631 = vrot.lane.b32.xlu1 %v3063_v9, %s2727_s14 }
 0x207   : > { %v3189_v37 = vpop.permute.xlu1 %1636 }
 0x208   : > { %673 = vrot.lane.b32.xlu0 %v3060_v7, %s2728_s17  ;;  %4519 = vst [vmem:[#allocation18_spill] sm:$0xff] %v3189_v37 }
 0x209   : > { %671 = vrot.lane.b32.xlu1 %v3063_v9, %s2728_s17 }
 0x20b   : > { %v3197_v39 = vpop.permute.xlu1 %1640 }
 0x20c   : > { %681 = vrot.lane.b32.xlu0 %v3060_v7, %s2729_s16  ;;  %4520 = vst [vmem:[#allocation19_spill] sm:$0xff] %v3197_v39 }
 0x20d   : > { %679 = vrot.lane.b32.xlu1 %v3063_v9, %s2729_s16 }
 0x20f   : > { %v3209_v41 = vpop.permute.xlu1 %1564 }
 0x210   : > { %721 = vrot.lane.b32.xlu0 %v3060_v7, %s2730_s18  ;;  %4521 = vst [vmem:[#allocation20_spill] sm:$0xff] %v3209_v41 }
 0x211   : > { %719 = vrot.lane.b32.xlu1 %v3063_v9, %s2730_s18 }
 0x213   : > { %v3217_v43 = vpop.permute.xlu1 %1664 }
 0x214   : > { %729 = vrot.lane.b32.xlu0 %v3060_v7, %s2731_s15  ;;  %4523 = vst [vmem:[#allocation22_spill] sm:$0xff] %v3217_v43  ;;  %v3315_v43 = vand.u32 15, %v543_v46 }
 0x215   : > { %727 = vrot.lane.b32.xlu1 %v3063_v9, %s2731_s15 }
 0x216   : > { %vm4483_vm3 = vcmp.ge.s32.totalorder %v3315_v43, 1  ;;  %vm4482_vm4 = vcmp.ge.s32.totalorder %v3315_v43, 2  ;;  %vm4485_vm5 = vcmp.ge.s32.totalorder %v3315_v43, 3  ;;  %vm4486_vm7 = vcmp.ge.s32.totalorder %v3315_v43, 4 }
 0x217   : > { %v3229_v45 = vpop.permute.xlu1 %1588  ;;  %vm4481_vm9 = vcmp.ge.s32.totalorder %v3315_v43, 5  ;;  %vm4484_vm13 = vcmp.ge.s32.totalorder %v3315_v43, 6 }
 0x218   : > { %769 = vrot.lane.b32.xlu0 %v3060_v7, %s4473_s19  ;;  %4525 = vst [vmem:[#allocation24_spill] sm:$0xff] %v3229_v45 }
 0x219   : > { %767 = vrot.lane.b32.xlu1 %v3063_v9, %s4473_s19  ;;  %s2753_s19 = smov 127  }
 0x21b   : > { %v3237_v48 = vpop.permute.xlu1 %1592 }
 0x21c   : > { %777 = vrot.lane.b32.xlu0 %v3060_v7, %s4467_s13  ;;  %4527 = vst [vmem:[#allocation26_spill] sm:$0xff] %v3237_v48 }
 0x21d   : > { %775 = vrot.lane.b32.xlu1 %v3063_v9, %s4467_s13  ;;  %s2750_s13 = smov 14  }
 0x21f   : > { %v3249_v50 = vpop.permute.xlu1 %1696 }
 0x220   : > { %817 = vrot.lane.b32.xlu0 %v3060_v7, %s4465_s20  ;;  %4528 = vst [vmem:[#allocation27_spill] sm:$0xff] %v3249_v50 }
 0x221   : > { %815 = vrot.lane.b32.xlu1 %v3063_v9, %s4465_s20  ;;  %s4471_s20 = smov 125  }
 0x224   : > { %825 = vrot.lane.b32.xlu0 %v3060_v7, %s4443_s21 }
 0x225   : > { %823 = vrot.lane.b32.xlu1 %v3063_v9, %s4443_s21  ;;  %s4449_s21 = smov 8  }
 0x228   : > { %865 = vrot.lane.b32.xlu0 %v3060_v7, %s4445_s22 }
 0x229   : > { %863 = vrot.lane.b32.xlu1 %v3063_v9, %s4445_s22  ;;  %s4451_s22 = smov 120  }
 0x22c   : > { %873 = vrot.lane.b32.xlu0 %v3060_v7, %s4447_s23 }
 0x22d   : > { %871 = vrot.lane.b32.xlu1 %v3063_v9, %s4447_s23  ;;  %s4453_s23 = smov 9  }
 0x230   : > { %913 = vrot.lane.b32.xlu0 %v3060_v7, %s4449_s21 }
 0x231   : > { %911 = vrot.lane.b32.xlu1 %v3063_v9, %s4449_s21  ;;  %s4455_s21 = smov 121  }
 0x234   : > { %921 = vrot.lane.b32.xlu0 %v3060_v7, %s4451_s22 }
 0x235   : > { %919 = vrot.lane.b32.xlu1 %v3063_v9, %s4451_s22  ;;  %s4457_s22 = smov 10  }
 0x238   : > { %961 = vrot.lane.b32.xlu0 %v3060_v7, %s4453_s23 }
 0x239   : > { %959 = vrot.lane.b32.xlu1 %v3063_v9, %s4453_s23  ;;  %s4459_s23 = smov 122  }
 0x23c   : > { %969 = vrot.lane.b32.xlu0 %v3060_v7, %s4455_s21 }
 0x23d   : > { %967 = vrot.lane.b32.xlu1 %v3063_v9, %s4455_s21  ;;  %s4461_s21 = smov 11  }
 0x240   : > { %1009 = vrot.lane.b32.xlu0 %v3060_v7, %s4457_s22 }
 0x241   : > { %1007 = vrot.lane.b32.xlu1 %v3063_v9, %s4457_s22  ;;  %s4463_s22 = smov 123  }
 0x244   : > { %1017 = vrot.lane.b32.xlu0 %v3060_v7, %s4459_s23 }
 0x245   : > { %1015 = vrot.lane.b32.xlu1 %v3063_v9, %s4459_s23  ;;  %s2746_s23 = smov 12  }
 0x248   : > { %1057 = vrot.lane.b32.xlu0 %v3060_v7, %s4461_s21 }
 0x249   : > { %1055 = vrot.lane.b32.xlu1 %v3063_v9, %s4461_s21  ;;  %s2747_s21 = smov 124  }
 0x24c   : > { %1065 = vrot.lane.b32.xlu0 %v3060_v7, %s4463_s22 }
 0x24d   : > { %1063 = vrot.lane.b32.xlu1 %v3063_v9, %s4463_s22  ;;  %s4469_s22 = smov 13  }
 0x250   : > { %1105 = vrot.lane.b32.xlu0 %v3060_v7, %s2746_s23 }
 0x251   : > { %1103 = vrot.lane.b32.xlu1 %v3063_v9, %s2746_s23 }
 0x254   : > { %1113 = vrot.lane.b32.xlu0 %v3060_v7, %s2747_s21 }
 0x255   : > { %1111 = vrot.lane.b32.xlu1 %v3063_v9, %s2747_s21 }
 0x258   : > { %1153 = vrot.lane.b32.xlu0 %v3060_v7, %s4469_s22 }
 0x259   : > { %1151 = vrot.lane.b32.xlu1 %v3063_v9, %s4469_s22  ;;  %s2751_s22 = smov 126  }
 0x25c   : > { %1161 = vrot.lane.b32.xlu0 %v3060_v7, %s4471_s20 }
 0x25d   : > { %1159 = vrot.lane.b32.xlu1 %v3063_v9, %s4471_s20  ;;  %s2752_s20 = smov 15  }
 0x260   : > { %1201 = vrot.lane.b32.xlu0 %v3060_v7, %s2750_s13 }
 0x261   : > { %1199 = vrot.lane.b32.xlu1 %v3063_v9, %s2750_s13 }
 0x264   : > { %1209 = vrot.lane.b32.xlu0 %v3060_v7, %s2751_s22 }
 0x265   : > { %1207 = vrot.lane.b32.xlu1 %v3063_v9, %s2751_s22 }
 0x268   : > { %1249 = vrot.lane.b32.xlu0 %v3060_v7, %s2752_s20 }
 0x269   : > { %1247 = vrot.lane.b32.xlu1 %v3063_v9, %s2752_s20 }
 0x26a   : > { %v578_v51 = vpop.permute.xlu0 %577 }
 0x26b   : > { %v3255_v53 = vpop.permute.xlu1 %575 }
 0x26c   : > { %1257 = vrot.lane.b32.xlu0 %v3060_v7, %s2753_s19 }
 0x26d   : > { %1255 = vrot.lane.b32.xlu1 %v3063_v9, %s2753_s19 }
 0x26e   : > { %v586_v8 = vpop.permute.xlu0 %585 }
 0x26f   : > { %v3265_v25 = vpop.permute.xlu1 %583  ;;  %v592_v46 = vsel %vm4483_vm3, %v578_v51, %v586_v8 }
 0x270   : > { %581 = vrot.lane.b32.xlu0 %v3263_v5, %s2724_s29  ;;  %vm600_vm6 = vcmp.eq.f32.partialorder %v592_v46, %v3060_v7  ;;  %vm596_vm10 = vcmp.gt.f32.partialorder %v592_v46, %v3060_v7 }
 0x271   : > { %1109 = vrot.lane.b32.xlu1 %v3263_v5, %s2746_s23  ;;  %vm604_vm11 = vmand %vm600_vm6, %vm4483_vm3  ;;  %vm4487_vm6 = vcmp.ge.s32.totalorder %v3315_v43, 7 }
 0x272   : > { %v626_v52 = vpop.permute.xlu0 %625  ;;  %vm3377_vm0 = vmor %vm596_vm10, %vm604_vm11 }
 0x273   : > { %v3271_v47 = vpop.permute.xlu1 %623 }
 0x274   : > { %589 = vrot.lane.b32.xlu0 %v3263_v5, %s2725_s8 }
 0x275   : > { %1117 = vrot.lane.b32.xlu1 %v3263_v5, %s2747_s21 }
 0x276   : > { %v634_v28 = vpop.permute.xlu0 %633 }
 0x277   : > { %v632_v10 = vpop.permute.xlu1 %631  ;;  %v640_v37 = vsel %vm4482_vm4, %v626_v52, %v634_v28 }
 0x278   : > { %629 = vrot.lane.b32.xlu0 %v3263_v5, %s2726_s9  ;;  %vm648_vm8 = vcmp.eq.f32.partialorder %v640_v37, %v3060_v7  ;;  %vm644_vm14 = vcmp.gt.f32.partialorder %v640_v37, %v3060_v7  ;;  %v4559_v37 = vmov 0 }
 0x279   : > { %1205 = vrot.lane.b32.xlu1 %v3263_v5, %s2750_s13  ;;  %vm652_vm15 = vmand %vm648_vm8, %vm4482_vm4 }
 0x27a   : > { %v674_v48 = vpop.permute.xlu0 %673  ;;  %vm656_vm11 = vmor %vm644_vm14, %vm652_vm15 }
 0x27b   : > { %v3281_v45 = vpop.permute.xlu1 %671 }
 0x27c   : > { %637 = vrot.lane.b32.xlu0 %v3263_v5, %s2727_s14 }
 0x27d   : > { %1213 = vrot.lane.b32.xlu1 %v3263_v5, %s2751_s22 }
 0x27e   : > { %v682_v41 = vpop.permute.xlu0 %681 }
 0x27f   : > { %v3291_v42 = vpop.permute.xlu1 %679  ;;  %v688_v51 = vsel %vm4485_vm5, %v674_v48, %v682_v41  ;;  %v3363_v41 = vsel %vm4483_vm3, %v3255_v53, %v3265_v25  ;;  %v4492_v53 = vmov 0.0  }
 0x280   : > { %677 = vrot.lane.b32.xlu0 %v3263_v5, %s2728_s17  ;;  %vm696_vm12 = vcmp.eq.f32.partialorder %v688_v51, %v3060_v7  ;;  %vm692_vm8 = vcmp.gt.f32.partialorder %v688_v51, %v3060_v7  ;;  %vm599_vm10 = vcmp.eq.f32.partialorder %v3363_v41, %v3063_v9  ;;  %v2249_v51 = vsel %vm3377_vm0, 1.0, %v4492_v53 }
 0x281   : > { %579 = vrot.lane.b32.xlu1 %v3289_v44, %s2724_s29  ;;  %s4529_s29 = smov 5   ;;  %vm700_vm2 = vmand %vm696_vm12, %vm4485_vm5 }
 0x282   : > { %v722_v35 = vpop.permute.xlu0 %721  ;;  %vm704_vm14 = vmor %vm692_vm8, %vm700_vm2  ;;  %vm4542_vm8 = vcmp.ge.s32.totalorder %v3315_v43, 5 }
 0x283   : > { %v3297_v50 = vpop.permute.xlu1 %719 }
 0x284   : > { %685 = vrot.lane.b32.xlu0 %v3263_v5, %s2729_s16 }
 0x285   : > { %587 = vrot.lane.b32.xlu1 %v3289_v44, %s2725_s8  ;;  %s4530_s8 = smov 117  }
 0x286   : > { %v730_v54 = vpop.permute.xlu0 %729 }
 0x287   : > { %v3303_v11 = vpop.permute.xlu1 %727  ;;  %v736_v8 = vsel %vm4486_vm7, %v722_v35, %v730_v54  ;;  %v3371_v35 = vsel %vm4482_vm4, %v3271_v47, %v632_v10  ;;  %v2253_v10 = vsel %vm656_vm11, 1.0, %v4492_v53  ;;  %vm4488_vm11 = vcmp.ge.s32.totalorder %v3315_v43, 8 }
 0x288   : > { %725 = vrot.lane.b32.xlu0 %v3263_v5, %s2730_s18  ;;  %vm744_vm1 = vcmp.eq.f32.partialorder %v736_v8, %v3060_v7  ;;  %vm740_vm3 = vcmp.gt.f32.partialorder %v736_v8, %v3060_v7 }
 0x289   : > { %627 = vrot.lane.b32.xlu1 %v3289_v44, %s2726_s9  ;;  %s4531_s9 = smov 6   ;;  %vm748_vm12 = vmand %vm744_vm1, %vm4486_vm7  ;;  %vm4539_vm1 = vcmp.ge.s32.totalorder %v3315_v43, 2 }
 0x28a   : > { %v770_v27 = vpop.permute.xlu0 %769 }
 0x28b   : > { %v3309_v22 = vpop.permute.xlu1 %767 }
 0x28c   : > { %733 = vrot.lane.b32.xlu0 %v3263_v5, %s2731_s15 }
 0x28d   : > { %635 = vrot.lane.b32.xlu1 %v3289_v44, %s2727_s14  ;;  %s4532_s14 = smov 118  }
 0x28e   : > { %v778_v36 = vpop.permute.xlu0 %777 }
 0x28f   : > { %v3317_v39 = vpop.permute.xlu1 %775  ;;  %v784_v48 = vsel %vm4481_vm9, %v770_v27, %v778_v36  ;;  %vm647_vm9 = vcmp.eq.f32.partialorder %v3371_v35, %v3063_v9 }
 0x290   : > { %773 = vrot.lane.b32.xlu0 %v3263_v5, %s4529_s29  ;;  %vm792_vm4 = vcmp.eq.f32.partialorder %v784_v48, %v3060_v7  ;;  %vm3414_vm7 = vmand %vm647_vm9, %vm4539_vm1  ;;  %vm788_vm2 = vcmp.gt.f32.partialorder %v784_v48, %v3060_v7  ;;  %vm4545_vm9 = vcmp.ge.s32.totalorder %v3315_v43, 6  ;;  %v668_v48 = vadd.f32 %v2253_v10, %v2249_v51 }
 0x291   : > { %675 = vrot.lane.b32.xlu1 %v3289_v44, %s2728_s17  ;;  %s4535_s17 = smov 7  }
 0x292   : > { %v818_v31 = vpop.permute.xlu0 %817 }
 0x293   : > { %v3324_v15 = vpop.permute.xlu1 %815 }
 0x294   : > { %781 = vrot.lane.b32.xlu0 %v3263_v5, %s4530_s8 }
 0x295   : > { %683 = vrot.lane.b32.xlu1 %v3289_v44, %s2729_s16  ;;  %s4543_s16 = smov 119  }
 0x296   : > { %v826_v34 = vpop.permute.xlu0 %825 }
 0x297   : > { %v3336_v12 = vpop.permute.xlu1 %823  ;;  %v832_v47 = vsel %vm4484_vm13, %v818_v31, %v826_v34  ;;  %vm4536_vm13 = vcmp.ge.s32.totalorder %v3315_v43, 1 }
 0x298   : > { %821 = vrot.lane.b32.xlu0 %v3263_v5, %s4531_s9  ;;  %vm840_vm15 = vcmp.eq.f32.partialorder %v832_v47, %v3060_v7  ;;  %vm3407_vm5 = vmand %vm599_vm10, %vm4536_vm13 }
 0x299   : > { %723 = vrot.lane.b32.xlu1 %v3289_v44, %s2730_s18  ;;  %vm752_vm13 = vmor %vm740_vm3, %vm748_vm12  ;;  %vm836_vm3 = vcmp.gt.f32.partialorder %v832_v47, %v3060_v7  ;;  %s4547_s18 = smov 8  }
 0x29a   : > { %v866_v52 = vpop.permute.xlu0 %865  ;;  %vm844_vm12 = vmand %vm840_vm15, %vm4545_vm9 }
 0x29b   : > { %v3353_v28 = vpop.permute.xlu1 %863 }
 0x29c   : > { %829 = vrot.lane.b32.xlu0 %v3263_v5, %s4532_s14 }
 0x29d   : > { %731 = vrot.lane.b32.xlu1 %v3289_v44, %s2731_s15  ;;  %s4552_s15 = smov 120  }
 0x29e   : > { %v874_v25 = vpop.permute.xlu0 %873 }
 0x29f   : > { %v3388_v27 = vpop.permute.xlu1 %871  ;;  %v880_v34 = vsel %vm4487_vm6, %v866_v52, %v874_v25  ;;  %vm796_vm6 = vmand %vm792_vm4, %vm4542_vm8  ;;  %v2257_v52 = vsel %vm704_vm14, 1.0, %v4492_v53  ;;  %vm4544_vm4 = vcmp.ge.s32.totalorder %v3315_v43, 3  ;;  %v2261_v25 = vsel %vm752_vm13, 1.0, %v4492_v53 }
 0x2a0   : > { %869 = vrot.lane.b32.xlu0 %v3263_v5, %s4535_s17  ;;  %vm888_vm10 = vcmp.eq.f32.partialorder %v880_v34, %v3060_v7  ;;  %v687_v8 = vsel %vm4544_vm4, %v3281_v45, %v3291_v42  ;;  %vm800_vm1 = vmor %vm788_vm2, %vm796_vm6  ;;  %vm884_vm0 = vcmp.gt.f32.partialorder %v880_v34, %v3060_v7  ;;  %vm4546_vm14 = vcmp.ge.s32.totalorder %v3315_v43, 7 }
 0x2a1   : > { %771 = vrot.lane.b32.xlu1 %v3289_v44, %s4529_s29  ;;  %vm892_vm8 = vmand %vm888_vm10, %vm4546_vm14  ;;  %v716_v47 = vadd.f32 %v2257_v52, %v668_v48  ;;  %vm695_vm15 = vcmp.eq.f32.partialorder %v687_v8, %v3063_v9  ;;  %v2265_v10 = vsel %vm800_vm1, 1.0, %v4492_v53  ;;  %vm4548_vm13 = vcmp.ge.s32.totalorder %v3315_v43, 4  ;;  %s4564_s29 = smov 9  }
 0x2a2   : > { %v914_v36 = vpop.permute.xlu0 %913  ;;  %vm848_vm4 = vmor %vm836_vm3, %vm844_vm12  ;;  %v735_v51 = vsel %vm4548_vm13, %v3297_v50, %v3303_v11  ;;  %vm595_vm3 = vcmp.gt.f32.partialorder %v3363_v41, %v3063_v9  ;;  %vm643_vm12 = vcmp.gt.f32.partialorder %v3371_v35, %v3063_v9  ;;  %vm4549_vm1 = vcmp.ge.s32.totalorder %v3315_v43, 3 }
 0x2a3   : > { %v3421_v46 = vpop.permute.xlu1 %911  ;;  %vm896_vm10 = vmor %vm884_vm0, %vm892_vm8  ;;  %vm4489_vm8 = vcmp.ge.s32.totalorder %v3315_v43, 9  ;;  %vm743_vm13 = vcmp.eq.f32.partialorder %v735_v51, %v3063_v9 }
 0x2a4   : > { %877 = vrot.lane.b32.xlu0 %v3263_v5, %s4543_s16  ;;  %vm3472_vm14 = vmand %vm695_vm15, %vm4549_vm1  ;;  %vm4553_vm15 = vcmp.ge.s32.totalorder %v3315_v43, 5  ;;  %v2273_v41 = vsel %vm896_vm10, 1.0, %v4492_v53 }
 0x2a5   : > { %779 = vrot.lane.b32.xlu1 %v3289_v44, %s4530_s8  ;;  %v783_v11 = vsel %vm4553_vm15, %v3309_v22, %v3317_v39  ;;  %s4568_s8 = smov 121  }
 0x2a6   : > { %v922_v54 = vpop.permute.xlu0 %921 }
 0x2a7   : > { %v928_v42 = vsel %vm4488_vm11, %v914_v36, %v922_v54  ;;  %v3448_v45 = vpop.permute.xlu1 %919  ;;  %v764_v36 = vadd.f32 %v2261_v25, %v716_v47  ;;  %v2269_v54 = vsel %vm848_vm4, 1.0, %v4492_v53  ;;  %vm3491_vm4 = vmor %vm595_vm3, %vm3407_vm5  ;;  %vm4561_vm5 = vcmp.ge.s32.totalorder %v3315_v43, 4 }
 0x2a8   : > { %vm936_vm9 = vcmp.eq.f32.partialorder %v928_v42, %v3060_v7  ;;  %917 = vrot.lane.b32.xlu0 %v3263_v5, %s4547_s18  ;;  %vm932_vm6 = vcmp.gt.f32.partialorder %v928_v42, %v3060_v7  ;;  %vm791_vm3 = vcmp.eq.f32.partialorder %v783_v11, %v3063_v9 }
 0x2a9   : > { %vm940_vm2 = vmand %vm936_vm9, %vm4488_vm11  ;;  %819 = vrot.lane.b32.xlu1 %v3289_v44, %s4531_s9  ;;  %vm691_vm9 = vcmp.gt.f32.partialorder %v687_v8, %v3063_v9  ;;  %v812_v50 = vadd.f32 %v2265_v10, %v764_v36  ;;  %s4580_s9 = smov 10  }
 0x2aa   : > { %v962_v52 = vpop.permute.xlu0 %961  ;;  %vm944_vm0 = vmor %vm932_vm6, %vm940_vm2  ;;  %vm4558_vm2 = vcmp.ge.s32.totalorder %v3315_v43, 6 }
 0x2ab   : > { %v960_v25 = vpop.permute.xlu1 %959  ;;  %vm3497_vm6 = vmor %vm643_vm12, %vm3414_vm7  ;;  %v860_v8 = vadd.f32 %v2269_v54, %v812_v50  ;;  %v831_v22 = vsel %vm4558_vm2, %v3324_v15, %v3336_v12  ;;  %v2277_v42 = vsel %vm944_vm0, 1.0, %v4492_v53  ;;  %vm739_vm0 = vcmp.gt.f32.partialorder %v735_v51, %v3063_v9 }
 0x2ac   : > { %925 = vrot.lane.b32.xlu0 %v3263_v5, %s4552_s15  ;;  %vm3507_vm10 = vmor %vm691_vm9, %vm3472_vm14  ;;  %vm839_vm14 = vcmp.eq.f32.partialorder %v831_v22, %v3063_v9  ;;  %vm787_vm2 = vcmp.gt.f32.partialorder %v783_v11, %v3063_v9 }
 0x2ad   : > { %827 = vrot.lane.b32.xlu1 %v3289_v44, %s4532_s14  ;;  %v4560_v37 = vsel %vm3507_vm10, 4294967295, %v4559_v37  ;;  %vm3516_vm7 = vmand %vm743_vm13, %vm4561_vm5  ;;  %v908_v12 = vadd.f32 %v2273_v41, %v860_v8  ;;  %vm4565_vm13 = vcmp.ge.s32.totalorder %v3315_v43, 7  ;;  %vm4566_vm5 = vcmp.ge.s32.totalorder %v3315_v43, 5  ;;  %s4584_s14 = smov 122  }
 0x2ae   : > { %v970_v39 = vpop.permute.xlu0 %969  ;;  %v879_v15 = vsel %vm4565_vm13, %v3353_v28, %v3388_v27  ;;  %vm795_vm11 = vmand %vm791_vm3, %vm4566_vm5  ;;  %vm4571_vm13 = vcmp.ge.s32.totalorder %v3315_v43, 8  ;;  %v2252_v8 = vsel %vm3497_vm6, 1.0, %v4492_v53 }
 0x2af   : > { %v976_v31 = vsel %vm4489_vm8, %v962_v52, %v970_v39  ;;  %v968_v47 = vpop.permute.xlu1 %967  ;;  %v956_v36 = vadd.f32 %v2277_v42, %v908_v12  ;;  %vm887_vm3 = vcmp.eq.f32.partialorder %v879_v15, %v3063_v9  ;;  %v927_v27 = vsel %vm4571_vm13, %v3421_v46, %v3448_v45 }
 0x2b0   : > { %vm980_vm12 = vcmp.gt.f32.partialorder %v976_v31, %v3060_v7  ;;  %vm984_vm1 = vcmp.eq.f32.partialorder %v976_v31, %v3060_v7  ;;  %965 = vrot.lane.b32.xlu0 %v3263_v5, %s4564_s29 }
 0x2b1   : > { %vm988_vm9 = vmand %vm984_vm1, %vm4489_vm8  ;;  %867 = vrot.lane.b32.xlu1 %v3289_v44, %s4535_s17  ;;  %vm835_vm1 = vcmp.gt.f32.partialorder %v831_v22, %v3063_v9  ;;  %vm4567_vm8 = vcmp.ge.s32.totalorder %v3315_v43, 6  ;;  %s4593_s17 = smov 11  }
 0x2b2   : > { %vm992_vm15 = vmor %vm980_vm12, %vm988_vm9  ;;  %v1010_v52 = vpop.permute.xlu0 %1009  ;;  %vm4501_vm12 = vcmp.ge.s32.totalorder %v3315_v43, 10 }
 0x2b3   : > { %v2281_v48 = vsel %vm992_vm15, 1.0, %v4492_v53  ;;  %v1008_v54 = vpop.permute.xlu1 %1007  ;;  %vm843_vm10 = vmand %vm839_vm14, %vm4567_vm8  ;;  %vm4574_vm14 = vcmp.ge.s32.totalorder %v3315_v43, 9  ;;  %vm935_vm15 = vcmp.eq.f32.partialorder %v927_v27, %v3063_v9 }
 0x2b4   : > { %v1004_v51 = vadd.f32 %v2281_v48, %v956_v36  ;;  %973 = vrot.lane.b32.xlu0 %v3263_v5, %s4568_s8  ;;  %vm3547_vm9 = vmor %vm739_vm0, %vm3516_vm7  ;;  %v975_v11 = vsel %vm4574_vm14, %v960_v25, %v968_v47  ;;  %v2248_v25 = vsel %vm3491_vm4, 1.0, %v4492_v53  ;;  %vm931_vm4 = vcmp.gt.f32.partialorder %v927_v27, %v3063_v9 }
 0x2b5   : > { %875 = vrot.lane.b32.xlu1 %v3289_v44, %s4543_s16  ;;  %vm3558_vm8 = vmor %vm787_vm2, %vm795_vm11  ;;  %vm4577_vm11 = vcmp.ge.s32.totalorder %v3315_v43, 7  ;;  %vm983_vm5 = vcmp.eq.f32.partialorder %v975_v11, %v3063_v9  ;;  %v667_v42 = vadd.f32 %v2252_v8, %v2248_v25  ;;  %vm4582_vm14 = vcmp.ge.s32.totalorder %v3315_v43, 8  ;;  %s4594_s16 = smov 123  }
 0x2b6   : > { %v1018_v41 = vpop.permute.xlu0 %1017  ;;  %vm3567_vm7 = vmor %vm835_vm1, %vm843_vm10  ;;  %vm4581_vm10 = vnez %v4560_v37  ;;  %v2260_v37 = vsel %vm3547_vm9, 1.0, %v4492_v53  ;;  %vm4498_vm9 = vcmp.ge.s32.totalorder %v3315_v43, 11 }
 0x2b7   : > { %v1024_v46 = vsel %vm4501_vm12, %v1010_v52, %v1018_v41  ;;  %v1016_v45 = vpop.permute.xlu1 %1015  ;;  %vm3575_vm0 = vmand %vm887_vm3, %vm4577_vm11  ;;  %v2256_v34 = vsel %vm4581_vm10, 1.0, %v4492_v53  ;;  %vm883_vm3 = vcmp.gt.f32.partialorder %v879_v15, %v3063_v9  ;;  %v2264_v52 = vsel %vm3558_vm8, 1.0, %v4492_v53 }
 0x2b8   : > { %vm1028_vm2 = vcmp.gt.f32.partialorder %v1024_v46, %v3060_v7  ;;  %vm1032_vm6 = vcmp.eq.f32.partialorder %v1024_v46, %v3060_v7  ;;  %1013 = vrot.lane.b32.xlu0 %v3263_v5, %s4580_s9  ;;  %v1023_v35 = vsel %vm4501_vm12, %v1008_v54, %v1016_v45  ;;  %vm939_vm11 = vmand %vm935_vm15, %vm4582_vm14  ;;  %v715_v12 = vadd.f32 %v2256_v34, %v667_v42 }
 0x2b9   : > { %vm1036_vm1 = vmand %vm1032_vm6, %vm4501_vm12  ;;  %915 = vrot.lane.b32.xlu1 %v3289_v44, %s4547_s18  ;;  %vm4583_vm6 = vcmp.ge.s32.totalorder %v3315_v43, 9  ;;  %v2268_v15 = vsel %vm3567_vm7, 1.0, %v4492_v53  ;;  %vm1027_vm7 = vcmp.gt.f32.partialorder %v1023_v35, %v3063_v9  ;;  %s4595_s18 = smov 13  }
 0x2ba   : > { %vm1040_vm13 = vmor %vm1028_vm2, %vm1036_vm1  ;;  %v1058_v31 = vpop.permute.xlu0 %1057  ;;  %vm979_vm2 = vcmp.gt.f32.partialorder %v975_v11, %v3063_v9  ;;  %v763_v54 = vadd.f32 %v2260_v37, %v715_v12 }
 0x2bb   : > { %v2285_v47 = vsel %vm1040_vm13, 1.0, %v4492_v53  ;;  %v1056_v10 = vpop.permute.xlu1 %1055  ;;  %vm987_vm10 = vmand %vm983_vm5, %vm4583_vm6  ;;  %vm1031_vm5 = vcmp.eq.f32.partialorder %v1023_v35, %v3063_v9 }
 0x2bc   : > { %v1052_v36 = vadd.f32 %v2285_v47, %v1004_v51  ;;  %1021 = vrot.lane.b32.xlu0 %v3263_v5, %s4584_s14  ;;  %vm3622_vm15 = vmor %vm883_vm3, %vm3575_vm0  ;;  %v811_v8 = vadd.f32 %v2264_v52, %v763_v54 }
 0x2bd   : > { %923 = vrot.lane.b32.xlu1 %v3289_v44, %s4552_s15  ;;  %vm3631_vm1 = vmor %vm931_vm4, %vm939_vm11  ;;  %v2272_v46 = vsel %vm3622_vm15, 1.0, %v4492_v53  ;;  %vm4500_vm15 = vcmp.ge.s32.totalorder %v3315_v43, 12  ;;  %s4596_s15 = smov 125  }
 0x2be   : > { %v1066_v28 = vpop.permute.xlu0 %1065  ;;  %vm3638_vm8 = vmor %vm979_vm2, %vm987_vm10  ;;  %v859_v45 = vadd.f32 %v2268_v15, %v811_v8  ;;  %v2276_v25 = vsel %vm3631_vm1, 1.0, %v4492_v53 }
 0x2bf   : > { %v1072_v11 = vsel %vm4498_vm9, %v1058_v31, %v1066_v28  ;;  %v1064_v41 = vpop.permute.xlu1 %1063  ;;  %vm3646_vm0 = vmand %vm1031_vm5, %vm4501_vm12  ;;  %v2280_v37 = vsel %vm3638_vm8, 1.0, %v4492_v53 }
 0x2c0   : > { %vm1076_vm3 = vcmp.gt.f32.partialorder %v1072_v11, %v3060_v7  ;;  %vm1080_vm13 = vcmp.eq.f32.partialorder %v1072_v11, %v3060_v7  ;;  %v1071_v22 = vsel %vm4498_vm9, %v1056_v10, %v1064_v41  ;;  %1061 = vrot.lane.b32.xlu0 %v3263_v5, %s4593_s17  ;;  %v907_v35 = vadd.f32 %v2272_v46, %v859_v45  ;;  %vm1039_vm10 = vmor %vm1027_vm7, %vm3646_vm0 }
 0x2c1   : > { %vm1084_vm4 = vmand %vm1080_vm13, %vm4498_vm9  ;;  %vm1079_vm14 = vcmp.eq.f32.partialorder %v1071_v22, %v3063_v9  ;;  %963 = vrot.lane.b32.xlu1 %v3289_v44, %s4564_s29  ;;  %vm1075_vm2 = vcmp.gt.f32.partialorder %v1071_v22, %v3063_v9  ;;  %v2284_v12 = vsel %vm1039_vm10, 1.0, %v4492_v53 }
 0x2c2   : > { %vm1088_vm11 = vmor %vm1076_vm3, %vm1084_vm4  ;;  %v1106_v39 = vpop.permute.xlu0 %1105  ;;  %v955_v47 = vadd.f32 %v2276_v25, %v907_v35 }
 0x2c3   : > { %v2289_v34 = vsel %vm1088_vm11, 1.0, %v4492_v53  ;;  %vm1083_vm6 = vmand %vm1079_vm14, %vm4498_vm9  ;;  %v1104_v42 = vpop.permute.xlu1 %1103  ;;  %vm4497_vm11 = vcmp.ge.s32.totalorder %v3315_v43, 13 }
 0x2c4   : > { %v1100_v31 = vadd.f32 %v2289_v34, %v1052_v36  ;;  %1069 = vrot.lane.b32.xlu0 %v3263_v5, %s4594_s16  ;;  %vm1087_vm5 = vmor %vm1075_vm2, %vm1083_vm6  ;;  %v1003_v48 = vadd.f32 %v2280_v37, %v955_v47 }
 0x2c5   : > { %971 = vrot.lane.b32.xlu1 %v3289_v44, %s4568_s8  ;;  %v2288_v51 = vsel %vm1087_vm5, 1.0, %v4492_v53 }
 0x2c6   : > { %v1114_v10 = vpop.permute.xlu0 %1113  ;;  %v1051_v28 = vadd.f32 %v2284_v12, %v1003_v48 }
 0x2c7   : > { %v1120_v36 = vsel %vm4500_vm15, %v1106_v39, %v1114_v10  ;;  %v1112_v52 = vpop.permute.xlu1 %1111 }
 0x2c8   : > { %vm1124_vm1 = vcmp.gt.f32.partialorder %v1120_v36, %v3060_v7  ;;  %vm1128_vm0 = vcmp.eq.f32.partialorder %v1120_v36, %v3060_v7  ;;  %v1119_v54 = vsel %vm4500_vm15, %v1104_v42, %v1112_v52  ;;  %1157 = vrot.lane.b32.xlu0 %v3263_v5, %s4595_s18  ;;  %v1099_v41 = vadd.f32 %v2288_v51, %v1051_v28 }
 0x2c9   : > { %vm1132_vm8 = vmand %vm1128_vm0, %vm4500_vm15  ;;  %vm1123_vm3 = vcmp.gt.f32.partialorder %v1119_v54, %v3063_v9  ;;  %vm1127_vm13 = vcmp.eq.f32.partialorder %v1119_v54, %v3063_v9  ;;  %1011 = vrot.lane.b32.xlu1 %v3289_v44, %s4580_s9 }
 0x2ca   : > { %vm1136_vm7 = vmor %vm1124_vm1, %vm1132_vm8  ;;  %v1154_v15 = vpop.permute.xlu0 %1153 }
 0x2cb   : > { %v2293_v50 = vsel %vm1136_vm7, 1.0, %v4492_v53  ;;  %vm1131_vm4 = vmand %vm1127_vm13, %vm4500_vm15  ;;  %v1152_v11 = vpop.permute.xlu1 %1151  ;;  %vm4499_vm13 = vcmp.ge.s32.totalorder %v3315_v43, 14 }
 0x2cc   : > { %v1148_v8 = vadd.f32 %v2293_v50, %v1100_v31  ;;  %vm1135_vm14 = vmor %vm1123_vm3, %vm1131_vm4  ;;  %1165 = vrot.lane.b32.xlu0 %v3263_v5, %s4596_s15 }
 0x2cd   : > { %v2292_v27 = vsel %vm1135_vm14, 1.0, %v4492_v53  ;;  %1019 = vrot.lane.b32.xlu1 %v3289_v44, %s4584_s14 }
 0x2ce   : > { %v1147_v22 = vadd.f32 %v2292_v27, %v1099_v41  ;;  %v1162_v46 = vpop.permute.xlu0 %1161 }
 0x2cf   : > { %v1168_v45 = vsel %vm4497_vm11, %v1154_v15, %v1162_v46  ;;  %v1160_v39 = vpop.permute.xlu1 %1159 }
 0x2d0   : > { %vm1172_vm2 = vcmp.gt.f32.partialorder %v1168_v45, %v3060_v7  ;;  %vm1176_vm6 = vcmp.eq.f32.partialorder %v1168_v45, %v3060_v7  ;;  %v1167_v25 = vsel %vm4497_vm11, %v1152_v11, %v1160_v39  ;;  %1253 = vrot.lane.b32.xlu0 %v3263_v5, %s2752_s20 }
 0x2d1   : > { %vm1180_vm10 = vmand %vm1176_vm6, %vm4497_vm11  ;;  %vm1171_vm5 = vcmp.gt.f32.partialorder %v1167_v25, %v3063_v9  ;;  %vm1175_vm1 = vcmp.eq.f32.partialorder %v1167_v25, %v3063_v9  ;;  %1059 = vrot.lane.b32.xlu1 %v3289_v44, %s4593_s17  ;;  %v3775_v25 = vld [vmem:[%s4435_s3 + $0x18] sm:$0xff] }
 0x2d2   : > { %vm1184_vm0 = vmor %vm1172_vm2, %vm1180_vm10  ;;  %v1202_v34 = vpop.permute.xlu0 %1201 }
 0x2d3   : > { %v2297_v42 = vsel %vm1184_vm0, 1.0, %v4492_v53  ;;  %vm1179_vm8 = vmand %vm1175_vm1, %vm4497_vm11  ;;  %v1200_v35 = vpop.permute.xlu1 %1199  ;;  %vm4490_vm0 = vcmp.ge.s32.totalorder %v3315_v43, 15 }
 0x2d4   : > { %v1196_v31 = vadd.f32 %v2297_v42, %v1148_v8  ;;  %vm1183_vm3 = vmor %vm1171_vm5, %vm1179_vm8  ;;  %1261 = vrot.lane.b32.xlu0 %v3263_v5, %s2753_s19 }
 0x2d5   : > { %v2296_v37 = vsel %vm1183_vm3, 1.0, %v4492_v53  ;;  %1067 = vrot.lane.b32.xlu1 %v3289_v44, %s4594_s16 }
 0x2d6   : > { %v1195_v47 = vadd.f32 %v2296_v37, %v1147_v22  ;;  %v1210_v10 = vpop.permute.xlu0 %1209 }
 0x2d7   : > { %v1216_v12 = vsel %vm4499_vm13, %v1202_v34, %v1210_v10  ;;  %v1208_v36 = vpop.permute.xlu1 %1207  ;;  %v4598_v10 = vmov 12  }
 0x2d8   : > { %vm1220_vm7 = vcmp.gt.f32.partialorder %v1216_v12, %v3060_v7  ;;  %vm1224_vm4 = vcmp.eq.f32.partialorder %v1216_v12, %v3060_v7  ;;  %v1215_v52 = vsel %vm4499_vm13, %v1200_v35, %v1208_v36  ;;  %1107 = vrot.lane.b32.xlu0 %v3289_v44, %s2746_s23  ;;  %v3793_v12 = vld [vmem:[%s4435_s3 + $0x10] sm:$0xff] }
 0x2d9   : > { %vm1228_vm14 = vmand %vm1224_vm4, %vm4499_vm13  ;;  %vm1219_vm2 = vcmp.gt.f32.partialorder %v1215_v52, %v3063_v9  ;;  %vm1223_vm6 = vcmp.eq.f32.partialorder %v1215_v52, %v3063_v9  ;;  %1155 = vrot.lane.b32.xlu1 %v3289_v44, %s4595_s18 }
 0x2da   : > { %vm1232_vm10 = vmor %vm1220_vm7, %vm1228_vm14  ;;  %v1250_v48 = vpop.permute.xlu0 %1249 }
 0x2db   : > { %v2301_v54 = vsel %vm1232_vm10, 1.0, %v4492_v53  ;;  %vm1227_vm5 = vmand %vm1223_vm6, %vm4499_vm13  ;;  %v1248_v51 = vpop.permute.xlu1 %1247 }
 0x2dc   : > { %v1244_v28 = vadd.f32 %v2301_v54, %v1196_v31  ;;  %vm1231_vm1 = vmor %vm1219_vm2, %vm1227_vm5  ;;  %1115 = vrot.lane.b32.xlu0 %v3289_v44, %s2747_s21  ;;  %vm4597_vm5 = vcmp.ge.s32.totalorder %v3315_v43, 1 }
 0x2dd   : > { %v2300_v15 = vsel %vm1231_vm1, 1.0, %v4492_v53  ;;  %1163 = vrot.lane.b32.xlu1 %v3289_v44, %s4596_s15 }
 0x2de   : > { %v1243_v50 = vadd.f32 %v2300_v15, %v1195_v47  ;;  %v1258_v11 = vpop.permute.xlu0 %1257 }
 0x2df   : > { %v1264_v41 = vsel %vm4490_vm0, %v1250_v48, %v1258_v11  ;;  %v1256_v8 = vpop.permute.xlu1 %1255  ;;  %v4600_v48 = vmov 13   ;;  %v2755_v11 = vmov 15  }
 0x2e0   : > { %vm1268_vm8 = vcmp.gt.f32.partialorder %v1264_v41, %v3060_v7  ;;  %vm1272_vm3 = vcmp.eq.f32.partialorder %v1264_v41, %v3060_v7  ;;  %v1263_v27 = vsel %vm4490_vm0, %v1248_v51, %v1256_v8  ;;  %1211 = vrot.lane.b32.xlu0 %v3289_v44, %s2751_s22  ;;  %v2608_v51 = vld [vmem:[%s4435_s3 + $0x8] sm:$0xff]  ;;  %v2609_v8 = vld [vmem:[%s4435_s3] sm:$0xff] }
 0x2e1   : > { %vm1276_vm7 = vmand %vm1272_vm3, %vm4490_vm0  ;;  %vm1267_vm4 = vcmp.gt.f32.partialorder %v1263_v27, %v3063_v9  ;;  %vm1271_vm14 = vcmp.eq.f32.partialorder %v1263_v27, %v3063_v9  ;;  %1203 = vrot.lane.b32.xlu1 %v3289_v44, %s2750_s13  ;;  %s282_s13 = sand.u32 1, %s2696_s25  }
 0x2e2   : > { %vm1280_vm2 = vmor %vm1268_vm8, %vm1276_vm7  ;;  %v582_v22 = vpop.permute.xlu0 %581  ;;  %s2237_s23 = sshll.u32 %s282_s13, 3  ;;  %s2147_s18 = scalar_lea.sflag [#allocation4], %s282_s13 }
 0x2e3   : > { %v2305_v46 = vsel %vm1280_vm2, 1.0, %v4492_v53  ;;  %vm1275_vm6 = vmand %vm1271_vm14, %vm4490_vm0  ;;  %v1110_v45 = vpop.permute.xlu1 %1109  ;;  %s284_s8 = scalar_lea.vmem [#allocation5], %s2237_s23 }
 0x2e4   : > { %v3770_v39 = vadd.f32 %v2305_v46, %v1244_v28  ;;  %vm1279_vm10 = vmor %vm1267_vm4, %vm1275_vm6  ;;  %1620 = vperm.xlu0 %2595, %v3775_v25   ;;  %vm4601_vm4 = vcmp.ge.s32.totalorder %v3315_v43, 2  ;;  %s2160_s9 = sshll.u32 %s284_s8, 4  ;;  %s4392_s9 = int_to_ptr.vmem [resolvable:$true] %s2160_s9 }
 0x2e5   : > { %v2304_v34 = vsel %vm1279_vm10, 1.0, %v4492_v53  ;;  %1251 = vrot.lane.b32.xlu1 %v3289_v44, %s2752_s20  ;;  %vm4599_vm3 = vmmov %vm4597_vm5  ;;  %s2638_s15 = scalar_lea.vmem %s4392_s9, 128 }
 0x2e6   : > { %v3781_v42 = vadd.f32 %v2304_v34, %v1243_v50  ;;  %v590_v35 = vpop.permute.xlu0 %589  ;;  %vm4602_vm10 = vmmov %vm4601_vm4  ;;  %p2639_p6 = scmp.ne.s32.totalorder %s4392_s9, %s2638_s15 }
 0x2e7   : > { %v594_v31 = vsel %vm4597_vm5, %v582_v22, %v590_v35  ;;  %v1118_v37 = vpop.permute.xlu1 %1117 }
 0x2e8   : > { %v3787_v47 = vsel %vm4500_vm15, %v1110_v45, %v1118_v37  ;;  %2599 = vset.pattern.permute.xlu0 %v4598_v10  ;;  %vm602_vm1 = vcmp.eq.f32.partialorder %v594_v31, %v3263_v5  ;;  %vm598_vm8 = vcmp.gt.f32.partialorder %v594_v31, %v3263_v5  ;;  %vm4625_vm15 = vcmp.ge.s32.totalorder %v3315_v43, 9  ;;  %p2640_p10 = pnand %p2639_p6, %p4717_p9 }
 0x2e9   : > { %1644 = vperm.xlu0 %2599, %v3793_v12   ;;  %1259 = vrot.lane.b32.xlu1 %v3289_v44, %s2753_s19  ;;  %vm606_vm7 = vmand %vm602_vm1, %vm4599_vm3  ;;  %s2317_s19 = sshll.u32 %s2820_s28, 7  ;;  %s2758_s28 = smov [#allocation5]  }
 0x2ea   : > { %v630_v36 = vpop.permute.xlu0 %629  ;;  %vm610_vm14 = vmor %vm598_vm8, %vm606_vm7  ;;  %vm4603_vm8 = vcmp.ge.s32.totalorder %v3315_v43, 3  ;;  %s4390_s16 = scalar_lea.hbm %s4439_s7, %s2317_s19  ;;  %p2641_p12 = pneg %p2640_p10 }
 0x2eb   : > { %v1206_v52 = vpop.permute.xlu1 %1205  ;;  %v2251_v27 = vsel %vm610_vm14, 1.0, %v4492_v53  ;;  %vm4605_vm14 = vmmov %vm4603_vm8  ;;  %s2642_s21 = sshll.u32 %s2758_s28, 4  ;;  %s2643_s21 = int_to_ptr.vmem [resolvable:$false] %s2642_s21 }
 0x2ec   : > { %s2644_s22 = scalar_lea.vmem %s2643_s21, 256  ;;  %p2645_p2 = scmp.lt.s32.totalorder %s4392_s9, %s2643_s21 }
 0x2ed   : > { %2600 = vset.pattern.permute.xlu0 %v4600_v48  ;;  %1616 = vperm.xlu1 %2597, %v3793_v12   ;;  %p2646_p3 = scmp.lt.s32.totalorder %s2644_s22, %s2638_s15 }
 0x2ee   : > { %v638_v54 = vpop.permute.xlu0 %637  ;;  %1668 = vperm.xlu0 %2600, %v2608_v51  }
 0x2ef   : > { %v642_v28 = vsel %vm4601_vm4, %v630_v36, %v638_v54  ;;  %v1214_v15 = vpop.permute.xlu1 %1213  ;;  %vm4604_vm4 = vcmp.ge.s32.totalorder %v3315_v43, 1  ;;  %p2647_p4 = por %p2646_p3, %p2645_p2 }
 0x2f0   : > { %vm646_vm2 = vcmp.gt.f32.partialorder %v642_v28, %v3263_v5  ;;  %vm650_vm6 = vcmp.eq.f32.partialorder %v642_v28, %v3263_v5  ;;  %v3813_v50 = vsel %vm4499_vm13, %v1206_v52, %v1214_v15 }
 0x2f1   : > { %vm654_vm5 = vmand %vm650_vm6, %vm4602_vm10  ;;  %2598 = vset.pattern.permute.xlu1 %v2755_v11  ;;  %p2648_p7 = pnand %p2647_p4, %p2641_p12 }
 0x2f2   : > { %vm658_vm1 = vmor %vm646_vm2, %vm654_vm5  ;;  %v678_v41 = vpop.permute.xlu0 %677  ;;  %1676 = vperm.xlu0 %2600, %v3775_v25   ;;  %1720 = vperm.xlu1 %2598, %v2609_v8  }
 0x2f3   : > { %v2255_v22 = vsel %vm658_vm1, 1.0, %v4492_v53  ;;  %v580_v46 = vpop.permute.xlu1 %579  ;;  %vm4606_vm1 = vmmov %vm4604_vm4 }
 0x2f4   : > { %v670_v45 = vadd.f32 %v2255_v22, %v2251_v27 }
 0x2f6   : > { %v686_v34 = vpop.permute.xlu0 %685  ;;  %2604 = vset.pattern.permute.xlu0 %v2755_v11  ;;  %1724 = vperm.xlu1 %2598, %v2608_v51  }
 0x2f7   : > { %v690_v35 = vsel %vm4603_vm8, %v678_v41, %v686_v34  ;;  %1728 = vperm.xlu0 %2604, %v3793_v12   ;;  %v588_v31 = vpop.permute.xlu1 %587  ;;  %v4613_v34 = vmov 14  }
 0x2f8   : > { %vm694_vm3 = vcmp.gt.f32.partialorder %v690_v35, %v3263_v5  ;;  %vm698_vm7 = vcmp.eq.f32.partialorder %v690_v35, %v3263_v5  ;;  %v593_v37 = vsel %vm4604_vm4, %v580_v46, %v588_v31  ;;  %v2756_v46 = vmov 0.0|0.0  }
 0x2f9   : > { %vm702_vm2 = vmand %vm698_vm7, %vm4605_vm14  ;;  %vm601_vm10 = vcmp.eq.f32.partialorder %v593_v37, %v3289_v44  ;;  %vm597_vm5 = vcmp.gt.f32.partialorder %v593_v37, %v3289_v44  ;;  %vm4607_vm7 = vcmp.ge.s32.totalorder %v3315_v43, 4  ;;  %2431 = vmatprep.subr.bf16.mxu0 %v2756_v46  ;;  %2437 = vmatprep.subr.bf16.mxu1 %v2756_v46 }
 0x2fa   : > { %vm706_vm6 = vmor %vm694_vm3, %vm702_vm2  ;;  %v726_v36 = vpop.permute.xlu0 %725  ;;  %2601 = vset.pattern.permute.xlu1 %v4598_v10  ;;  %vm4610_vm2 = vcmp.ge.s32.totalorder %v3315_v43, 2 }
 0x2fb   : > { %v2259_v52 = vsel %vm706_vm6, 1.0, %v4492_v53  ;;  %1648 = vperm.xlu1 %2601, %v3775_v25   ;;  %v628_v54 = vpop.permute.xlu1 %627  ;;  %vm605_vm8 = vmand %vm601_vm10, %vm4606_vm1 }
 0x2fc   : > { %v718_v51 = vadd.f32 %v2259_v52, %v670_v45  ;;  %vm3844_vm3 = vmor %vm597_vm5, %vm605_vm8 }
 0x2fd   : > { %vm4611_vm6 = vmmov %vm4607_vm7  ;;  %v2250_v35 = vsel %vm3844_vm3, 1.0, %v4492_v53 }
 0x2fe   : > { %v734_v28 = vpop.permute.xlu0 %733  ;;  %vm4612_vm8 = vmmov %vm4610_vm2 }
 0x2ff   : > { %v738_v15 = vsel %vm4607_vm7, %v726_v36, %v734_v28  ;;  %2602 = vset.pattern.permute.xlu1 %v4600_v48  ;;  %v636_v41 = vpop.permute.xlu1 %635 }
 0x300   : > { %vm742_vm4 = vcmp.gt.f32.partialorder %v738_v15, %v3263_v5  ;;  %vm746_vm14 = vcmp.eq.f32.partialorder %v738_v15, %v3263_v5  ;;  %v641_v8 = vsel %vm4610_vm2, %v628_v54, %v636_v41  ;;  %1672 = vperm.xlu1 %2602, %v3793_v12  }
 0x301   : > { %vm750_vm10 = vmand %vm746_vm14, %vm4611_vm6  ;;  %vm645_vm1 = vcmp.gt.f32.partialorder %v641_v8, %v3289_v44  ;;  %vm649_vm7 = vcmp.eq.f32.partialorder %v641_v8, %v3289_v44  ;;  %vm4615_vm6 = vcmp.ge.s32.totalorder %v3315_v43, 3 }
 0x302   : > { %vm754_vm5 = vmor %vm742_vm4, %vm750_vm10  ;;  %v774_v48 = vpop.permute.xlu0 %773  ;;  %vm4614_vm4 = vcmp.ge.s32.totalorder %v3315_v43, 5 }
 0x303   : > { %v2263_v27 = vsel %vm754_vm5, 1.0, %v4492_v53  ;;  %vm653_vm0 = vmand %vm649_vm7, %vm4612_vm8  ;;  %v676_v22 = vpop.permute.xlu1 %675 }
 0x304   : > { %v766_v45 = vadd.f32 %v2263_v27, %v718_v51  ;;  %vm657_vm2 = vmor %vm645_vm1, %vm653_vm0  ;;  %2603 = vset.pattern.permute.xlu1 %v4613_v34 }
 0x305   : > { %v2254_v31 = vsel %vm657_vm2, 1.0, %v4492_v53  ;;  %1700 = vperm.xlu1 %2603, %v3793_v12   ;;  %vm4616_vm10 = vmmov %vm4614_vm4 }
 0x306   : > { %v669_v37 = vadd.f32 %v2254_v31, %v2250_v35  ;;  %v782_v36 = vpop.permute.xlu0 %781  ;;  %vm4617_vm8 = vmmov %vm4615_vm6 }
 0x307   : > { %v786_v52 = vsel %vm4614_vm4, %v774_v48, %v782_v36  ;;  %v684_v54 = vpop.permute.xlu1 %683 }
 0x308   : > { %vm790_vm14 = vcmp.gt.f32.partialorder %v786_v52, %v3263_v5  ;;  %vm794_vm0 = vcmp.eq.f32.partialorder %v786_v52, %v3263_v5  ;;  %v689_v51 = vsel %vm4615_vm6, %v676_v22, %v684_v54  ;;  %v1820_v52 = vld [vmem:[#allocation2 + $0x40] sm:$0xff]  ;;  %vm4619_vm6 = vcmp.ge.s32.totalorder %v3315_v43, 7 }
 0x309   : > { %vm798_vm3 = vmand %vm794_vm0, %vm4616_vm10  ;;  %vm693_vm1 = vcmp.gt.f32.partialorder %v689_v51, %v3289_v44  ;;  %vm697_vm7 = vcmp.eq.f32.partialorder %v689_v51, %v3289_v44  ;;  %1704 = vperm.xlu1 %2603, %v3775_v25   ;;  %v1821_v54 = vld [vmem:[#allocation2 + $0x60] sm:$0xff]  ;;  %vm4618_vm0 = vcmp.ge.s32.totalorder %v3315_v43, 6 }
 0x30a   : > { %vm802_vm5 = vmor %vm790_vm14, %vm798_vm3  ;;  %v822_v12 = vpop.permute.xlu0 %821  ;;  %vm4495_vm14 = vmmov 0   ;;  %vm4620_vm3 = vcmp.ge.s32.totalorder %v3315_v43, 8 }
 0x30b   : > { %v2267_v28 = vsel %vm802_vm5, 1.0, %v4492_v53  ;;  %vm701_vm2 = vmand %vm697_vm7, %vm4617_vm8  ;;  %v3882_v15 = vpop.permute.xlu1 %723  ;;  %2384 = vmatprep.mubr.msk.f32.mxu0 %vm4495_vm14, %v4492_v53  ;;  %2395 = vmatprep.mubr.msk.f32.mxu1 %vm4495_vm14, %v4492_v53 }
 0x30c   : > { %v3884_v41 = vadd.f32 %v2267_v28, %v766_v45  ;;  %vm705_vm4 = vmor %vm693_vm1, %vm701_vm2  ;;  %vm4622_vm2 = vcmp.ge.s32.totalorder %v3315_v43, 9 }
 0x30d   : > { %v2258_v10 = vsel %vm705_vm4, 1.0, %v4492_v53  ;;  %2605 = vset.pattern.permute.xlu1 %v2755_v11  ;;  %vm4621_vm5 = vmmov %vm4618_vm0 }
 0x30e   : > { %v3888_v8 = vadd.f32 %v2258_v10, %v669_v37  ;;  %v830_v48 = vpop.permute.xlu0 %829  ;;  %1732 = vperm.xlu1 %2605, %v3775_v25   ;;  %v1818_v37 = vld [vmem:[#allocation2] sm:$0xff]  ;;  %v2441_v10 = vpack.c.bf16 %v1821_v54, %v1820_v52 }
 0x30f   : > { %v3891_v27 = vpop.permute.xlu1 %731  ;;  %v1819_v25 = vld [vmem:[#allocation2 + $0x20] sm:$0xff]  ;;  %v834_v53 = vsel %vm4618_vm0, %v822_v12, %v830_v48 }
 0x310   : > { %v2438_v36 = vpack.c.bf16 %v1819_v25, %v1818_v37  ;;  %vm842_vm10 = vcmp.eq.f32.partialorder %v834_v53, %v3263_v5  ;;  %vm838_vm7 = vcmp.gt.f32.partialorder %v834_v53, %v3263_v5  ;;  %v4624_v53 = vmov 0.0  }
 0x311   : > { %vm846_vm8 = vmand %vm842_vm10, %vm4621_vm5  ;;  %vm4623_vm10 = vcmp.ge.s32.totalorder %v3315_v43, 8 }
 0x312   : > { %v870_v22 = vpop.permute.xlu0 %869  ;;  %2439 = vmatpush3.bf16.msra.mxu1 %v2438_v36  ;;  %vm850_vm14 = vmor %vm838_vm7, %vm846_vm8 }
 0x313   : > { %v3893_v34 = vpop.permute.xlu1 %771  ;;  %2440 = vmatprep.subr.bf16.mxu1 %v2756_v46 }
 0x316   : > { %v878_v35 = vpop.permute.xlu0 %877  ;;  %2442 = vmatpush3.bf16.msra.mxu1 %v2441_v10 }
 0x317   : > { %v3899_v45 = vpop.permute.xlu1 %779  ;;  %2443 = vmatprep.subr.bf16.mxu1 %v2756_v46  ;;  %v882_v37 = vsel %vm4619_vm6, %v870_v22, %v878_v35  ;;  %v2271_v35 = vsel %vm850_vm14, 1.0, %v4624_v53  ;;  %vm1130_vm14 = vcmp.eq.f32.partialorder %v3787_v47, %v3263_v5 }
 0x318   : > { %vm890_vm1 = vcmp.eq.f32.partialorder %v882_v37, %v3263_v5  ;;  %vm886_vm0 = vcmp.gt.f32.partialorder %v882_v37, %v3263_v5  ;;  %v862_v10 = vadd.f32 %v2271_v35, %v3884_v41 }
 0x31a   : > { %v918_v11 = vpop.permute.xlu0 %917 }
 0x31b   : > { %v3901_v31 = vpop.permute.xlu1 %819 }
 0x31e   : > { %v926_v51 = vpop.permute.xlu0 %925 }
 0x31f   : > { %v828_v28 = vpop.permute.xlu1 %827  ;;  %v930_v36 = vsel %vm4620_vm3, %v918_v11, %v926_v51  ;;  %vm894_vm3 = vmand %vm890_vm1, %vm4619_vm6  ;;  %vm4626_vm1 = vcmp.ge.s32.totalorder %v3315_v43, 10 }
 0x320   : > { %vm938_vm4 = vcmp.eq.f32.partialorder %v930_v36, %v3263_v5  ;;  %vm934_vm9 = vcmp.gt.f32.partialorder %v930_v36, %v3263_v5  ;;  %vm898_vm13 = vmor %vm886_vm0, %vm894_vm3  ;;  %vm4628_vm3 = vcmp.ge.s32.totalorder %v3315_v43, 12 }
 0x321   : > { %vm942_vm5 = vmand %vm938_vm4, %vm4623_vm10  ;;  %v2275_v51 = vsel %vm898_vm13, 1.0, %v4624_v53  ;;  %vm1126_vm13 = vcmp.gt.f32.partialorder %v3787_v47, %v3263_v5 }
 0x322   : > { %v966_v7 = vpop.permute.xlu0 %965  ;;  %vm946_vm7 = vmor %vm934_vm9, %vm942_vm5  ;;  %vm1226_vm9 = vcmp.eq.f32.partialorder %v3813_v50, %v3263_v5  ;;  %vm4629_vm5 = vcmp.ge.s32.totalorder %v3315_v43, 4 }
 0x323   : > { %v3906_v9 = vpop.permute.xlu1 %867  ;;  %vm4627_vm0 = vmmov %vm4626_vm1  ;;  %v737_v41 = vsel %vm4629_vm5, %v3882_v15, %v3891_v27 }
 0x324   : > { %vm1134_vm10 = vmand %vm1130_vm14, %vm4628_vm3 }
 0x325   : > { %vm3981_vm14 = vmor %vm1126_vm13, %vm1134_vm10 }
 0x326   : > { %v974_v25 = vpop.permute.xlu0 %973 }
 0x327   : > { %v3914_v52 = vpop.permute.xlu1 %875  ;;  %v978_v12 = vsel %vm4622_vm2, %v966_v7, %v974_v25  ;;  %v2279_v25 = vsel %vm946_vm7, 1.0, %v4624_v53  ;;  %vm4631_vm7 = vcmp.ge.s32.totalorder %v3315_v43, 14 }
 0x328   : > { %vm986_vm11 = vcmp.eq.f32.partialorder %v978_v12, %v3263_v5  ;;  %vm982_vm2 = vcmp.gt.f32.partialorder %v978_v12, %v3263_v5  ;;  %v910_v12 = vadd.f32 %v2275_v51, %v862_v10 }
 0x329   : > { %vm990_vm12 = vmand %vm986_vm11, %vm4625_vm15 }
 0x32a   : > { %v1014_v48 = vpop.permute.xlu0 %1013  ;;  %vm994_vm15 = vmor %vm982_vm2, %vm990_vm12  ;;  %vm1222_vm12 = vcmp.gt.f32.partialorder %v3813_v50, %v3263_v5  ;;  %vm4630_vm2 = vcmp.ge.s32.totalorder %v3315_v43, 5  ;;  %v958_v35 = vadd.f32 %v2279_v25, %v910_v12 }
 0x32b   : > { %v3926_v22 = vpop.permute.xlu1 %915 }
 0x32e   : > { %v1022_v7 = vpop.permute.xlu0 %1021 }
 0x32f   : > { %v1026_v11 = vsel %vm4626_vm1, %v1014_v48, %v1022_v7  ;;  %v924_v54 = vpop.permute.xlu1 %923  ;;  %v2283_v48 = vsel %vm994_vm15, 1.0, %v4624_v53  ;;  %v785_v7 = vsel %vm4630_vm2, %v3893_v34, %v3899_v45  ;;  %vm1295_vm1 = vcmp.eq.f32.partialorder %v3781_v42, 0.0 }
 0x330   : > { %vm1034_vm8 = vcmp.eq.f32.partialorder %v1026_v11, %v3263_v5  ;;  %vm1030_vm4 = vcmp.gt.f32.partialorder %v1026_v11, %v3263_v5  ;;  %vm745_vm15 = vcmp.eq.f32.partialorder %v737_v41, %v3289_v44  ;;  %v1006_v25 = vadd.f32 %v2283_v48, %v958_v35 }
 0x331   : > { %vm1038_vm6 = vmand %vm1034_vm8, %vm4627_vm0  ;;  %vm4635_vm0 = vcmp.ge.s32.totalorder %v3315_v43, 11  ;;  %vm793_vm3 = vcmp.eq.f32.partialorder %v785_v7, %v3289_v44  ;;  %v1319_v48 = vsel %vm1295_vm1, %v3030_v55, 0.0 }
 0x332   : > { %v1062_v37 = vpop.permute.xlu0 %1061  ;;  %vm1042_vm11 = vmor %vm1030_vm4, %vm1038_vm6  ;;  %vm4634_vm4 = vcmp.ge.s32.totalorder %v3315_v43, 6  ;;  %vm1323_vm6 = vcmp.eq.f32.partialorder %v3781_v42, 1.0 }
 0x333   : > { %v964_v36 = vpop.permute.xlu1 %963  ;;  %vm3967_vm8 = vmand %vm1226_vm9, %vm4631_vm7  ;;  %v833_v15 = vsel %vm4634_vm4, %v3901_v31, %v828_v28  ;;  %v2287_v27 = vsel %vm1042_vm11, 1.0, %v4624_v53  ;;  %vm1324_vm4 = vcmp.eq.f32.partialorder %v3770_v39, 1.0  ;;  %v1343_v35 = vsel %vm1323_vm6, %v3032_v56, 0.0 }
 0x334   : > { %vm4638_vm5 = vmmov %vm4635_vm0  ;;  %vm841_vm10 = vcmp.eq.f32.partialorder %v833_v15, %v3289_v44  ;;  %v1054_v31 = vadd.f32 %v2287_v27, %v1006_v25  ;;  %v1344_v55 = vsel %vm1324_vm4, %v3034_v57, 0.0  ;;  %v2295_v56 = vsel %vm3981_vm14, 1.0, %v4624_v53 }
 0x335   : > { %vm3998_vm13 = vmor %vm1222_vm12, %vm3967_vm8  ;;  %vm789_vm12 = vcmp.gt.f32.partialorder %v785_v7, %v3289_v44  ;;  %vm4644_vm8 = vcmp.ge.s32.totalorder %v3315_v43, 5  ;;  %vm837_vm1 = vcmp.gt.f32.partialorder %v833_v15, %v3289_v44  ;;  %vm4648_vm6 = vcmp.ge.s32.totalorder %v3315_v43, 6 }
 0x336   : > { %v1070_v11 = vpop.permute.xlu0 %1069  ;;  %vm4652_vm14 = vcmp.ge.s32.totalorder %v3315_v43, 8 }
 0x337   : > { %v1074_v10 = vsel %vm4635_vm0, %v1062_v37, %v1070_v11  ;;  %v972_v34 = vpop.permute.xlu1 %971 }
 0x338   : > { %vm1078_vm9 = vcmp.gt.f32.partialorder %v1074_v10, %v3263_v5  ;;  %vm1082_vm11 = vcmp.eq.f32.partialorder %v1074_v10, %v3263_v5  ;;  %v929_v10 = vsel %vm4652_vm14, %v3926_v22, %v924_v54 }
 0x339   : > { %vm1086_vm2 = vmand %vm1082_vm11, %vm4638_vm5  ;;  %vm741_vm11 = vcmp.gt.f32.partialorder %v737_v41, %v3289_v44  ;;  %vm4641_vm5 = vcmp.ge.s32.totalorder %v3315_v43, 4 }
 0x33a   : > { %vm1090_vm0 = vmor %vm1078_vm9, %vm1086_vm2  ;;  %v1158_v28 = vpop.permute.xlu0 %1157  ;;  %vm4647_vm9 = vcmp.eq.f32.partialorder %v3770_v39, 0.0  ;;  %vm4649_vm2 = vcmp.ge.s32.totalorder %v3315_v43, 7 }
 0x33b   : > { %vm4006_vm7 = vmand %vm745_vm15, %vm4641_vm5  ;;  %v2291_v12 = vsel %vm1090_vm0, 1.0, %v4624_v53  ;;  %v1012_v50 = vpop.permute.xlu1 %1011  ;;  %v1320_v27 = vsel %vm4647_vm9, %v3097_v16, 0.0  ;;  %v881_v16 = vsel %vm4649_vm2, %v3906_v9, %v3914_v52  ;;  %vm1352_vm0 = vcmp.eq.f32.partialorder %v3770_v39, 2.0 }
 0x33c   : > { %vm4022_vm15 = vmand %vm793_vm3, %vm4644_vm8  ;;  %v1102_v51 = vadd.f32 %v2291_v12, %v1054_v31  ;;  %v1347_v31 = vadd.f32 %v1343_v35, %v1319_v48  ;;  %v1348_v54 = vadd.f32 %v1344_v55, %v1320_v27  ;;  %vm885_vm2 = vcmp.gt.f32.partialorder %v881_v16, %v3289_v44 }
 0x33d   : > { %vm845_vm3 = vmand %vm841_vm10, %vm4648_vm6  ;;  %vm1351_vm10 = vcmp.eq.f32.partialorder %v3781_v42, 2.0  ;;  %vm1379_vm6 = vcmp.eq.f32.partialorder %v3781_v42, 3.0  ;;  %vm4660_vm9 = vcmp.ge.s32.totalorder %v3315_v43, 7 }
 0x33e   : > { %vm4049_vm4 = vmor %vm741_vm11, %vm4006_vm7  ;;  %v1166_v45 = vpop.permute.xlu0 %1165  ;;  %v1150_v25 = vadd.f32 %v2295_v56, %v1102_v51  ;;  %vm4655_vm7 = vcmp.ge.s32.totalorder %v3315_v43, 9  ;;  %vm4656_vm11 = vcmp.ge.s32.totalorder %v3315_v43, 13  ;;  %v1371_v7 = vsel %vm1351_vm10, %v3115_v19, 0.0 }
 0x33f   : > { %vm4061_vm5 = vmor %vm789_vm12, %vm4022_vm15  ;;  %v977_v52 = vsel %vm4655_vm7, %v964_v36, %v972_v34  ;;  %v1170_v41 = vsel %vm4656_vm11, %v1158_v28, %v1166_v45  ;;  %v1020_v22 = vpop.permute.xlu1 %1019  ;;  %v1372_v36 = vsel %vm1352_vm0, %v3036_v58, 0.0  ;;  %v1375_v34 = vadd.f32 %v1371_v7, %v1347_v31 }
 0x340   : > { %vm4071_vm8 = vmor %vm837_vm1, %vm845_vm3  ;;  %vm1174_vm12 = vcmp.gt.f32.partialorder %v1170_v41, %v3263_v5  ;;  %vm1178_vm15 = vcmp.eq.f32.partialorder %v1170_v41, %v3263_v5  ;;  %vm985_vm1 = vcmp.eq.f32.partialorder %v977_v52, %v3289_v44  ;;  %v1376_v12 = vadd.f32 %v1372_v36, %v1348_v54 }
 0x341   : > { %vm4659_vm14 = vmmov %vm4656_vm11  ;;  %vm1408_vm11 = vcmp.eq.f32.partialorder %v3770_v39, 4.0  ;;  %vm4664_vm0 = vcmp.eq.f32.partialorder %v3770_v39, 3.0  ;;  %v2262_v35 = vsel %vm4049_vm4, 1.0, %v4624_v53  ;;  %vm933_vm10 = vcmp.gt.f32.partialorder %v929_v10, %v3289_v44 }
 0x342   : > { %vm1182_vm7 = vmand %vm1178_vm15, %vm4659_vm14  ;;  %v1254_v15 = vpop.permute.xlu0 %1253  ;;  %vm4661_vm15 = vcmp.eq.f32.partialorder %v881_v16, %v3289_v44  ;;  %v1400_v48 = vsel %vm4664_vm0, %v3135_v23, 0.0  ;;  %v2303_v23 = vsel %vm3998_vm13, 1.0, %v4624_v53  ;;  %vm981_vm4 = vcmp.gt.f32.partialorder %v977_v52, %v3289_v44 }
 0x343   : > { %vm1186_vm3 = vmor %vm1174_vm12, %vm1182_vm7  ;;  %v1060_v19 = vpop.permute.xlu1 %1059  ;;  %vm4665_vm12 = vcmp.ge.s32.totalorder %v3315_v43, 8  ;;  %v1428_v56 = vsel %vm1408_vm11, %v3040_v60, 0.0  ;;  %v2266_v47 = vsel %vm4061_vm5, 1.0, %v4624_v53  ;;  %v765_v60 = vadd.f32 %v2262_v35, %v3888_v8 }
 0x344   : > { %vm4094_vm14 = vmand %vm4661_vm15, %vm4660_vm9  ;;  %v2299_v58 = vsel %vm1186_vm3, 1.0, %v4624_v53  ;;  %vm4666_vm9 = vcmp.eq.f32.partialorder %v929_v10, %v3289_v44  ;;  %vm4669_vm3 = vcmp.ge.s32.totalorder %v3315_v43, 10  ;;  %vm4670_vm15 = vcmp.ge.s32.totalorder %v3315_v43, 9 }
 0x345   : > { %vm4110_vm7 = vmand %vm4666_vm9, %vm4665_vm12  ;;  %v1198_v51 = vadd.f32 %v2299_v58, %v1150_v25  ;;  %v1025_v27 = vsel %vm4669_vm3, %v1012_v50, %v1020_v22  ;;  %v1399_v50 = vsel %vm1379_vm6, %v3038_v59, 0.0  ;;  %v1404_v41 = vadd.f32 %v1400_v48, %v1376_v12 }
 0x346   : > { %vm4124_vm0 = vmand %vm985_vm1, %vm4670_vm15  ;;  %v1262_v25 = vpop.permute.xlu0 %1261  ;;  %v1403_v31 = vadd.f32 %v1399_v50, %v1375_v34  ;;  %vm1407_vm1 = vcmp.eq.f32.partialorder %v3781_v42, 4.0  ;;  %vm1033_vm6 = vcmp.eq.f32.partialorder %v1025_v27, %v3289_v44  ;;  %v2270_v22 = vsel %vm4071_vm8, 1.0, %v4624_v53 }
 0x347   : > { %vm4141_vm13 = vmor %vm885_vm2, %vm4094_vm14  ;;  %v1246_v45 = vadd.f32 %v2303_v23, %v1198_v51  ;;  %vm4677_vm2 = vcmp.ge.s32.totalorder %v3315_v43, 15  ;;  %v1068_v9 = vpop.permute.xlu1 %1067  ;;  %vm4680_vm12 = vcmp.ge.s32.totalorder %v3315_v43, 11  ;;  %v813_v54 = vadd.f32 %v2266_v47, %v765_v60 }
 0x348   : > { %vm4151_vm5 = vmor %vm933_vm10, %vm4110_vm7  ;;  %v1266_v16 = vsel %vm4677_vm2, %v1254_v15, %v1262_v25  ;;  %v1073_v10 = vsel %vm4680_vm12, %v1060_v19, %v1068_v9  ;;  %vm1436_vm3 = vcmp.eq.f32.partialorder %v3770_v39, 5.0  ;;  %v1427_v52 = vsel %vm1407_vm1, %v2996_v29, 0.0 }
 0x349   : > { %vm4165_vm11 = vmor %vm981_vm4, %vm4124_vm0  ;;  %vm1270_vm14 = vcmp.gt.f32.partialorder %v1266_v16, %v3263_v5  ;;  %vm1274_vm10 = vcmp.eq.f32.partialorder %v1266_v16, %v3263_v5  ;;  %vm1081_vm8 = vcmp.eq.f32.partialorder %v1073_v10, %v3289_v44  ;;  %v2274_v37 = vsel %vm4141_vm13, 1.0, %v4624_v53 }
 0x34a   : > { %vm4681_vm9 = vmmov %vm4677_vm2  ;;  %vm1029_vm4 = vcmp.gt.f32.partialorder %v1025_v27, %v3289_v44  ;;  %vm4682_vm15 = vcmp.ge.s32.totalorder %v3315_v43, 10  ;;  %v1108_v36 = vpop.permute.xlu0 %1107  ;;  %v1431_v7 = vadd.f32 %v1427_v52, %v1403_v31  ;;  %vm1435_vm2 = vcmp.eq.f32.partialorder %v3781_v42, 5.0 }
 0x34b   : > { %vm1278_vm7 = vmand %vm1274_vm10, %vm4681_vm9  ;;  %v861_v15 = vadd.f32 %v2270_v22, %v813_v54  ;;  %v1156_v34 = vpop.permute.xlu1 %1155  ;;  %v1432_v28 = vadd.f32 %v1428_v56, %v1404_v41  ;;  %v2278_v58 = vsel %vm4151_vm5, 1.0, %v4624_v53  ;;  %vm1077_vm13 = vcmp.gt.f32.partialorder %v1073_v10, %v3289_v44 }
 0x34c   : > { %vm1037_vm0 = vmand %vm1033_vm6, %vm4682_vm15  ;;  %v1456_v12 = vsel %vm1436_vm3, %v3048_v0, 0.0  ;;  %v1455_v48 = vsel %vm1435_vm2, %v3165_v32, 0.0  ;;  %v2282_v35 = vsel %vm4165_vm11, 1.0, %v4624_v53  ;;  %vm1464_vm5 = vcmp.eq.f32.partialorder %v3770_v39, 6.0 }
 0x34d   : > { %vm4191_vm10 = vmor %vm1270_vm14, %vm1278_vm7  ;;  %v909_v19 = vadd.f32 %v2274_v37, %v861_v15  ;;  %v1459_v51 = vadd.f32 %v1455_v48, %v1431_v7  ;;  %vm1463_vm14 = vcmp.eq.f32.partialorder %v3781_v42, 6.0  ;;  %vm4686_vm7 = vcmp.ge.s32.totalorder %v3315_v43, 12 }
 0x34e   : > { %vm4685_vm1 = vmmov %vm4680_vm12  ;;  %v1116_v11 = vpop.permute.xlu0 %1115  ;;  %v2307_v23 = vsel %vm4191_vm10, 1.0, %v4624_v53  ;;  %v1460_v55 = vadd.f32 %v1456_v12, %v1432_v28  ;;  %vm4687_vm3 = vcmp.ge.s32.totalorder %v3315_v43, 13  ;;  %v1483_v57 = vsel %vm1463_vm14, %v3052_v2, 0.0 }
 0x34f   : > { %vm1085_vm6 = vmand %vm1081_vm8, %vm4685_vm1  ;;  %v957_v27 = vadd.f32 %v2278_v58, %v909_v19  ;;  %v1121_v0 = vsel %vm4686_vm7, %v1108_v36, %v1116_v11  ;;  %v1164_v32 = vpop.permute.xlu1 %1163  ;;  %vm1491_vm2 = vcmp.eq.f32.partialorder %v3781_v42, 7.0  ;;  %v4227_v25 = vadd.f32 %v2307_v23, %v1246_v45 }
 0x350   : > { %vm1041_vm12 = vmor %vm1029_vm4, %vm1037_vm0  ;;  %vm1125_vm11 = vcmp.gt.f32.partialorder %v1121_v0, %v3289_v44  ;;  %vm1129_vm8 = vcmp.eq.f32.partialorder %v1121_v0, %v3289_v44  ;;  %v1169_v50 = vsel %vm4687_vm3, %v1156_v34, %v1164_v32  ;;  %v1487_v59 = vadd.f32 %v1483_v57, %v1459_v51 }
 0x351   : > { %vm1089_vm9 = vmor %vm1077_vm13, %vm1085_vm6  ;;  %v2286_v56 = vsel %vm1041_vm12, 1.0, %v4624_v53  ;;  %v1005_v47 = vadd.f32 %v2282_v35, %v957_v27  ;;  %vm1177_vm0 = vcmp.eq.f32.partialorder %v1169_v50, %v3289_v44  ;;  %vm1173_vm13 = vcmp.gt.f32.partialorder %v1169_v50, %v3289_v44 }
 0x352   : > { %vm4688_vm4 = vmmov %vm4686_vm7  ;;  %v2290_v31 = vsel %vm1089_vm9, 1.0, %v4624_v53  ;;  %v1212_v60 = vpop.permute.xlu0 %1211  ;;  %v1484_v2 = vsel %vm1464_vm5, %v3054_v3, 0.0  ;;  %vm4690_vm12 = vcmp.ge.s32.totalorder %v3315_v43, 14  ;;  %vm1492_vm14 = vcmp.eq.f32.partialorder %v3770_v39, 7.0 }
 0x353   : > { %vm1133_vm15 = vmand %vm1129_vm8, %vm4688_vm4  ;;  %v1053_v16 = vadd.f32 %v2286_v56, %v1005_v47  ;;  %v1204_v9 = vpop.permute.xlu1 %1203  ;;  %v1488_v22 = vadd.f32 %v1484_v2, %v1460_v55  ;;  %v1511_v10 = vsel %vm1491_vm2, %v3058_v6, 0.0  ;;  %vm1298_vm4 = vcmp.eq.f32.partialorder %v4227_v25, 0.0  ;;  %v4695_v2 = vld [vmem:[#allocation18_spill] sm:$0xff] }
 0x354   : > { %vm1137_vm10 = vmor %vm1125_vm11, %vm1133_vm15  ;;  %v1217_v45 = vsel %vm4690_vm12, %v1204_v9, %v1212_v60  ;;  %vm1519_vm11 = vcmp.eq.f32.partialorder %v3781_v42, 8.0  ;;  %vm1326_vm15 = vcmp.eq.f32.partialorder %v4227_v25, 1.0  ;;  %v1515_v3 = vadd.f32 %v1511_v10, %v1487_v59 }
 0x355   : > { %vm4689_vm1 = vmmov %vm4687_vm3  ;;  %v2294_v41 = vsel %vm1137_vm10, 1.0, %v4624_v53  ;;  %v1101_v8 = vadd.f32 %v2290_v31, %v1053_v16  ;;  %vm1225_vm7 = vcmp.eq.f32.partialorder %v1217_v45, %v3289_v44  ;;  %vm1221_vm5 = vcmp.gt.f32.partialorder %v1217_v45, %v3289_v44  ;;  %v4694_v16 = vld [vmem:[#allocation10_spill] sm:$0xff]  ;;  %v4696_v45 = vld [vmem:[#allocation15_spill] sm:$0xff] }
 0x356   : > { %vm1181_vm6 = vmand %vm1177_vm0, %vm4689_vm1  ;;  %v1322_v36 = vsel %vm1298_vm4, %v3109_v18, 0.0  ;;  %v1346_v6 = vsel %vm1326_vm15, %v3046_v63, 0.0  ;;  %v1512_v7 = vsel %vm1492_vm14, %v3155_v30, 0.0  ;;  %v1539_v15 = vsel %vm1519_vm11, %v3205_v40, 0.0 }
 0x357   : > { %vm1185_vm9 = vmor %vm1173_vm13, %vm1181_vm6  ;;  %v1149_v54 = vadd.f32 %v2294_v41, %v1101_v8  ;;  %v1252_v52 = vpop.permute.xlu1 %1251  ;;  %v1516_v29 = vadd.f32 %v1512_v7, %v1488_v22  ;;  %vm1520_vm2 = vcmp.eq.f32.partialorder %v3770_v39, 8.0  ;;  %v1543_v34 = vadd.f32 %v1539_v15, %v1515_v3  ;;  %v4697_v3 = vld [vmem:[#allocation11_spill] sm:$0xff]  ;;  %v4699_v7 = vld [vmem:[#allocation17_spill] sm:$0xff] }
 0x358   : > { %vm4691_vm8 = vmmov %vm4690_vm12  ;;  %v2298_v37 = vsel %vm1185_vm9, 1.0, %v4624_v53  ;;  %vm1547_vm10 = vcmp.eq.f32.partialorder %v3781_v42, 9.0  ;;  %vm4692_vm13 = vcmp.ge.s32.totalorder %v3315_v43, 15  ;;  %v1350_v63 = vadd.f32 %v1346_v6, %v1322_v36 }
 0x359   : > { %vm1229_vm3 = vmand %vm1225_vm7, %vm4691_vm8  ;;  %v1197_v28 = vadd.f32 %v2298_v37, %v1149_v54  ;;  %vm1354_vm1 = vcmp.eq.f32.partialorder %v4227_v25, 2.0  ;;  %v1540_v30 = vsel %vm1520_vm2, %v3089_v14, 0.0  ;;  %v1567_v40 = vsel %vm1547_vm10, %v3107_v17, 0.0  ;;  %v4698_v37 = vld [vmem:[#allocation19_spill] sm:$0xff] }
 0x35a   : > { %vm1233_vm0 = vmor %vm1221_vm5, %vm1229_vm3  ;;  %v1544_v12 = vadd.f32 %v1540_v30, %v1516_v29  ;;  %vm1548_vm7 = vcmp.eq.f32.partialorder %v3770_v39, 9.0  ;;  %v1571_v48 = vadd.f32 %v1567_v40, %v1543_v34  ;;  %vm1575_vm11 = vcmp.eq.f32.partialorder %v3781_v42, 10.0 }
 0x35b   : > { %v1260_v58 = vpop.permute.xlu1 %1259  ;;  %v2302_v19 = vsel %vm1233_vm0, 1.0, %v4624_v53  ;;  %vm4693_vm14 = vmmov %vm4692_vm13  ;;  %v1374_v11 = vsel %vm1354_vm1, %v3125_v21, 0.0  ;;  %vm1382_vm8 = vcmp.eq.f32.partialorder %v4227_v25, 3.0  ;;  %v1568_v17 = vsel %vm1548_vm7, %v3117_v20, 0.0 }
 0x35c   : > { %v1265_v18 = vsel %vm4692_vm13, %v1252_v52, %v1260_v58  ;;  %v1245_v35 = vadd.f32 %v2302_v19, %v1197_v28  ;;  %v1378_v27 = vadd.f32 %v1374_v11, %v1350_v63  ;;  %v1595_v43 = vsel %vm1575_vm11, %v3137_v24, 0.0  ;;  %v4700_v28 = vld [vmem:[#allocation22_spill] sm:$0xff]  ;;  %v4701_v19 = vld [vmem:[#allocation12_spill] sm:$0xff] }
 0x35d   : > { %vm1269_vm6 = vcmp.gt.f32.partialorder %v1265_v18, %v3289_v44  ;;  %vm1273_vm12 = vcmp.eq.f32.partialorder %v1265_v18, %v3289_v44  ;;  %v1572_v23 = vadd.f32 %v1568_v17, %v1544_v12  ;;  %vm1576_vm3 = vcmp.eq.f32.partialorder %v3770_v39, 10.0  ;;  %v4702_v12 = vld [vmem:[#allocation13_spill] sm:$0xff] }
 0x35e   : > { %vm1277_vm9 = vmand %vm1273_vm12, %vm4693_vm14  ;;  %v1599_v0 = vadd.f32 %v1595_v43, %v1571_v48  ;;  %vm1603_vm4 = vcmp.eq.f32.partialorder %v3781_v42, 11.0  ;;  %v1402_v21 = vsel %vm1382_vm8, %v3056_v4, 0.0  ;;  %vm1410_vm10 = vcmp.eq.f32.partialorder %v4227_v25, 4.0 }
 0x35f   : > { %vm1281_vm5 = vmor %vm1269_vm6, %vm1277_vm9  ;;  %v1406_v55 = vadd.f32 %v1402_v21, %v1378_v27  ;;  %v1596_v50 = vsel %vm1576_vm3, %v3195_v38, 0.0  ;;  %vm1604_vm1 = vcmp.eq.f32.partialorder %v3770_v39, 11.0  ;;  %v1623_v57 = vsel %vm1603_vm4, %v3245_v49, 0.0  ;;  %v4703_v27 = vld [vmem:[#allocation25_spill] sm:$0xff] }
 0x360   : > { %v2306_v51 = vsel %vm1281_vm5, 1.0, %v4624_v53  ;;  %v1600_v47 = vadd.f32 %v1596_v50, %v1572_v23  ;;  %vm1631_vm6 = vcmp.eq.f32.partialorder %v3781_v42, 12.0  ;;  %vm1438_vm14 = vcmp.eq.f32.partialorder %v4227_v25, 5.0  ;;  %v4704_v23 = vld [vmem:[#allocation14_spill] sm:$0xff] }
 0x361   : > { %v4274_v14 = vadd.f32 %v2306_v51, %v1245_v35  ;;  %v1624_v49 = vsel %vm1604_vm1, %v3169_v33, 0.0  ;;  %vm1632_vm7 = vcmp.eq.f32.partialorder %v3770_v39, 12.0  ;;  %v1651_v41 = vsel %vm1631_vm6, %v4695_v2, 0.0 }
 0x362   : > { %v1628_v9 = vadd.f32 %v1624_v49, %v1600_v47  ;;  %vm1659_vm11 = vcmp.eq.f32.partialorder %v3781_v42, 13.0  ;;  %v1458_v22 = vsel %vm1438_vm14, %v4696_v45, 0.0  ;;  %vm1466_vm8 = vcmp.eq.f32.partialorder %v4227_v25, 6.0 }
 0x363   : > { %v4280_v32 = vpop.permute.xlu0 %1620  ;;  %vm1297_vm15 = vcmp.eq.f32.partialorder %v4274_v14, 0.0  ;;  %vm1325_vm0 = vcmp.eq.f32.partialorder %v4274_v14, 1.0  ;;  %vm1353_vm2 = vcmp.eq.f32.partialorder %v4274_v14, 2.0  ;;  %vm1381_vm13 = vcmp.eq.f32.partialorder %v4274_v14, 3.0 }
 0x364   : > { %v1321_v20 = vsel %vm1297_vm15, %v3042_v61, 0.0  ;;  %v1345_v24 = vsel %vm1325_vm0, %v3044_v62, 0.0  ;;  %v1373_v4 = vsel %vm1353_vm2, %v3050_v1, 0.0  ;;  %v1430_v61 = vsel %vm1410_vm10, %v3083_v13, 0.0 }
 0x365   : > { %v1349_v56 = vadd.f32 %v1345_v24, %v1321_v20  ;;  %vm1409_vm12 = vcmp.eq.f32.partialorder %v4274_v14, 4.0  ;;  %v1627_v62 = vadd.f32 %v1623_v57, %v1599_v0  ;;  %v1434_v60 = vadd.f32 %v1430_v61, %v1406_v55  ;;  %v4705_v55 = vld [vmem:[#allocation27_spill] sm:$0xff] }
 0x366   : > { %v1401_v1 = vsel %vm1381_vm13, %v3145_v26, 0.0  ;;  %vm1437_vm9 = vcmp.eq.f32.partialorder %v4274_v14, 5.0  ;;  %v1429_v13 = vsel %vm1409_vm12, %v4694_v16, 0.0  ;;  %vm1465_vm5 = vcmp.eq.f32.partialorder %v4274_v14, 6.0 }
 0x367   : > { %v1377_v31 = vadd.f32 %v1373_v4, %v1349_v56  ;;  %v1655_v26 = vadd.f32 %v1651_v41, %v1627_v62  ;;  %v1462_v10 = vadd.f32 %v1458_v22, %v1434_v60  ;;  %v1457_v33 = vsel %vm1437_vm9, %v4697_v3, 0.0  ;;  %v4706_v56 = vld [vmem:[#allocation16_spill] sm:$0xff] }
 0x368   : > { %v4300_v38 = vpop.permute.xlu0 %1644  ;;  %vm1493_vm3 = vcmp.eq.f32.partialorder %v4274_v14, 7.0  ;;  %v1652_v36 = vsel %vm1632_vm7, %v4698_v37, 0.0  ;;  %vm1660_vm4 = vcmp.eq.f32.partialorder %v3770_v39, 13.0  ;;  %v1485_v15 = vsel %vm1465_vm5, %v4699_v7, 0.0  ;;  %v4711_v22 = vld [vmem:[#allocation20_spill] sm:$0xff]  ;;  %v4713_v37 = vld [vmem:[#allocation26_spill] sm:$0xff] }
 0x369   : > { %v1405_v59 = vadd.f32 %v1401_v1, %v1377_v31  ;;  %v1656_v29 = vadd.f32 %v1652_v36, %v1628_v9  ;;  %v1679_v58 = vsel %vm1659_vm11, %v4700_v28, 0.0  ;;  %v1486_v18 = vsel %vm1466_vm8, %v4701_v19, 0.0  ;;  %v4707_v31 = vld [vmem:[#allocation21_spill] sm:$0xff]  ;;  %v4710_v9 = vld [vmem:[#allocation8_spill] sm:$0xff] }
 0x36a   : > { %v1683_v30 = vadd.f32 %v1679_v58, %v1655_v26  ;;  %vm1687_vm15 = vcmp.eq.f32.partialorder %v3781_v42, 14.0  ;;  %v1490_v40 = vadd.f32 %v1486_v18, %v1462_v10  ;;  %vm1494_vm0 = vcmp.eq.f32.partialorder %v4227_v25, 7.0  ;;  %v4712_v26 = vld [vmem:[#allocation24_spill] sm:$0xff] }
 0x36b   : > { %v1433_v8 = vadd.f32 %v1429_v13, %v1405_v59  ;;  %v1513_v48 = vsel %vm1493_vm3, %v4702_v12, 0.0  ;;  %vm1688_vm2 = vcmp.eq.f32.partialorder %v3770_v39, 14.0  ;;  %vm1521_vm10 = vcmp.eq.f32.partialorder %v4274_v14, 8.0  ;;  %v4708_v59 = vld [vmem:[#allocation23_spill] sm:$0xff]  ;;  %v4709_v13 = vld [vmem:[#allocation9_spill] sm:$0xff] }
 0x36c   : > { %v1617_v54 = vpop.permute.xlu1 %1616  ;;  %vm1715_vm13 = vcmp.eq.f32.partialorder %v3781_v42, 15.0  ;;  %v1707_v17 = vsel %vm1687_vm15, %v4703_v27, 0.0  ;;  %v1514_v0 = vsel %vm1494_vm0, %v4704_v23, 0.0  ;;  %v1708_v20 = vsel %vm1688_vm2, %v4705_v55, 0.0 }
 0x36d   : > { %v1461_v52 = vadd.f32 %v1457_v33, %v1433_v8  ;;  %v1669_v6 = vpop.permute.xlu0 %1668  ;;  %v1711_v21 = vadd.f32 %v1707_v17, %v1683_v30  ;;  %v1518_v24 = vadd.f32 %v1514_v0, %v1490_v40  ;;  %vm1522_vm1 = vcmp.eq.f32.partialorder %v4227_v25, 8.0 }
 0x36e   : > { %v1680_v34 = vsel %vm1660_vm4, %v1669_v6, 0.0  ;;  %v1541_v50 = vsel %vm1521_vm10, %v4706_v56, 0.0  ;;  %vm1716_vm6 = vcmp.eq.f32.partialorder %v3770_v39, 15.0  ;;  %vm1549_vm12 = vcmp.eq.f32.partialorder %v4274_v14, 9.0  ;;  %v1823_v56 = vld [vmem:[#allocation2 + $0x28] sm:$0xff] }
 0x36f   : > { %v1489_v63 = vadd.f32 %v1485_v15, %v1461_v52  ;;  %v1684_v11 = vadd.f32 %v1680_v34, %v1656_v29  ;;  %v1542_v62 = vsel %vm1522_vm1, %v4707_v31, 0.0  ;;  %vm1550_vm14 = vcmp.eq.f32.partialorder %v4227_v25, 9.0 }
 0x370   : > { %v1546_v1 = vadd.f32 %v1542_v62, %v1518_v24  ;;  %v1569_v49 = vsel %vm1549_vm12, %v4708_v59, 0.0  ;;  %vm1577_vm9 = vcmp.eq.f32.partialorder %v4274_v14, 10.0  ;;  %v1570_v8 = vsel %vm1550_vm14, %v4711_v22, 0.0  ;;  %v2308_v62 = vld [vmem:[%s4437_s5] ss:$0 sm:$0xff] }
 0x371   : > { %v1517_v35 = vadd.f32 %v1513_v48, %v1489_v63  ;;  %v1721_v51 = vpop.permute.xlu1 %1720  ;;  %v1712_v47 = vadd.f32 %v1708_v20, %v1684_v11  ;;  %v1597_v10 = vsel %vm1577_vm9, %v4712_v26, 0.0  ;;  %vm1578_vm7 = vcmp.eq.f32.partialorder %v4227_v25, 10.0  ;;  %v1677_v34 = vpop.permute.xlu0 %1676 }
 0x372   : > { %v1735_v43 = vsel %vm1715_vm13, %v1721_v51, 0.0  ;;  %v1574_v3 = vadd.f32 %v1570_v8, %v1546_v1  ;;  %vm1605_vm11 = vcmp.eq.f32.partialorder %v4274_v14, 11.0  ;;  %v1598_v36 = vsel %vm1578_vm7, %v4713_v37, 0.0 }
 0x373   : > { %v1545_v4 = vadd.f32 %v1541_v50, %v1517_v35  ;;  %v1739_v42 = vadd.f32 %v1735_v43, %v1711_v21  ;;  %v1625_v6 = vsel %vm1605_vm11, %v1617_v54, 0.0  ;;  %vm1606_vm5 = vcmp.eq.f32.partialorder %v4227_v25, 11.0 }
 0x374   : > { %v1602_v7 = vadd.f32 %v1598_v36, %v1574_v3  ;;  %v1626_v29 = vsel %vm1606_vm5, %v4280_v32, 0.0  ;;  %vm1633_vm8 = vcmp.eq.f32.partialorder %v4274_v14, 12.0  ;;  %vm1634_vm3 = vcmp.eq.f32.partialorder %v4227_v25, 12.0 }
 0x375   : > { %v1725_v57 = vpop.permute.xlu1 %1724  ;;  %v1573_v16 = vadd.f32 %v1569_v49, %v1545_v4  ;;  %v1743_v39 = vmul.f32 %v1739_v42, %v4709_v13  ;;  %vm1661_vm4 = vcmp.eq.f32.partialorder %v4274_v14, 13.0  ;;  %v1653_v28 = vsel %vm1633_vm8, %v4300_v38, 0.0 }
 0x376   : > { %v1736_v61 = vsel %vm1716_vm6, %v1725_v57, 0.0  ;;  %v1630_v63 = vadd.f32 %v1626_v29, %v1602_v7  ;;  %vm1689_vm15 = vcmp.eq.f32.partialorder %v4274_v14, 14.0  ;;  %vm1662_vm0 = vcmp.eq.f32.partialorder %v4227_v25, 13.0  ;;  %v1729_v48 = vpop.permute.xlu0 %1728  ;;  %v1826_v57 = vld [vmem:[#allocation2 + $0x10] sm:$0xff] }
 0x377   : > { %v1740_v60 = vadd.f32 %v1736_v61, %v1712_v47  ;;  %v1601_v33 = vadd.f32 %v1597_v10, %v1573_v16  ;;  %vm1690_vm2 = vcmp.eq.f32.partialorder %v4227_v25, 14.0  ;;  %v1682_v11 = vsel %vm1662_vm0, %v1677_v34, 0.0  ;;  %v1827_v61 = vld [vmem:[#allocation2 + $0x30] sm:$0xff]  ;;  %v2310_v16 = vld [vmem:[%s4437_s5 + $0x1] ss:$0 sm:$0xff] }
 0x378   : > { %vm1717_vm10 = vcmp.eq.f32.partialorder %v4274_v14, 15.0  ;;  %vm1718_vm13 = vcmp.eq.f32.partialorder %v4227_v25, 15.0  ;;  %v1747_v14 = vld [vmem:[%s4438_s6] sm:$0xff]  ;;  %vm4714_vm1 = vmmov 0   ;;  %v1822_v25 = vld [vmem:[#allocation2 + $0x8] sm:$0xff]  ;;  %vm4715_vm6 = vcmask 261120  }
 0x379   : > { %v1744_v2 = vmul.f32 %v1740_v60, %v4710_v9  ;;  %v1629_v15 = vadd.f32 %v1625_v6, %v1601_v33  ;;  %v1737_v27 = vsel %vm1717_vm10, %v1729_v48, 0.0  ;;  %v2444_v50 = vpack.c.bf16 %v1823_v56, %v1822_v25  ;;  %vm4716_vm12 = vmmov %vm4715_vm6 }
 0x37a   : > { %v1649_v41 = vpop.permute.xlu1 %1648  ;;  %v2450_v31 = vpack.c.bf16 %v1827_v61, %v1826_v57  ;;  %vm1992_vm14 = vcmask 130048  }
 0x37b   : > { %v2432_v45 = vpack.c.bf16 %v1744_v2, %v1743_v39  ;;  %v1654_v58 = vsel %vm1634_vm3, %v1649_v41, 0.0  ;;  %v1657_v54 = vadd.f32 %v1653_v28, %v1629_v15  ;;  %v1829_v2 = vld [vmem:[#allocation2 + $0x38] sm:$0xff] }
 0x37c   : > { %v1658_v40 = vadd.f32 %v1654_v58, %v1630_v63 }
 0x37d   : > { %2433 = vmatpush3.bf16.xpose.msra.mxu0 %v2432_v45  ;;  %v2312_v45 = vld [vmem:[%s4437_s5 + $0x2] ss:$0 sm:$0xff] }
 0x37e   : > { %2434 = vmatprep.subr.bf16.mxu0 %v2756_v46  ;;  %v1686_v38 = vadd.f32 %v1682_v11, %v1658_v40 }
 0x37f   : > { %v1673_v52 = vpop.permute.xlu1 %1672 }
 0x380   : > { %v1681_v19 = vsel %vm1661_vm4, %v1673_v52, 0.0 }
 0x381   : > { %v1685_v12 = vadd.f32 %v1681_v19, %v1657_v54 }
 0x384   : > { %v1701_v18 = vpop.permute.xlu1 %1700 }
 0x385   : > { %v1709_v30 = vsel %vm1689_vm15, %v1701_v18, 0.0 }
 0x386   : > { %v1713_v35 = vadd.f32 %v1709_v30, %v1685_v12 }
 0x388   : > { %v1705_v32 = vpop.permute.xlu1 %1704  ;;  %v1741_v17 = vadd.f32 %v1737_v27, %v1713_v35 }
 0x389   : > { %v1710_v51 = vsel %vm1690_vm2, %v1705_v32, 0.0 }
 0x38a   : > { %v1714_v43 = vadd.f32 %v1710_v51, %v1686_v38  ;;  %v1745_v55 = vmul.f32 %v1741_v17, %v3289_v44  ;;  %v1824_v44 = vld [vmem:[#allocation2 + $0x48] sm:$0xff] }
 0x38d   : > { %v1733_v23 = vpop.permute.xlu1 %1732 }
 0x38e   : > { %v1738_v0 = vsel %vm1718_vm13, %v1733_v23, 0.0 }
 0x38f   : > { %v1742_v21 = vadd.f32 %v1738_v0, %v1714_v43 }
 0x391   : > { %v1746_v20 = vmul.f32 %v1742_v21, %v3263_v5  ;;  %v1825_v5 = vld [vmem:[#allocation2 + $0x68] sm:$0xff] }
 0x392   : > { %v2447_v47 = vpack.c.bf16 %v1825_v5, %v1824_v44 }
 0x393   : > { %v2435_v24 = vpack.c.bf16 %v1746_v20, %v1745_v55 }
 0x395   : > { %2436 = vmatpush3.bf16.xpose.msra.mxu0 %v2435_v24 }
 0x396   : > { %2449 = vmatprep.subr.bf16.mxu0 %v2756_v46 }
 0x39c   : > { %2385 = vmatmul.mubr.f32.vlgmr.msra.gmra.mrb[4].mxu0 %v1747_v14 }
 0x39d   : > { %2413 = vmatprep.mubr.msk.f32.mxu0 %vm4714_vm1, %v4624_v53  ;;  %2451 = vmatpush3.bf16.msra.mxu0 %v2450_v31 }
 0x39e   : > { %2452 = vmatprep.subr.bf16.mxu0 %v2756_v46 }
 0x46f   : > { %v1814_v4 = vpop.f32.mrb[4].mxu0 }
 0x470   : > { %v2386_v42 = vpop.f32.mrb[5].mxu0  ;;  %2396 = vmatmul.mubr.msk.f32.vlgmr.msra.gmra.mrb[4].mxu1 %vm4715_vm6, %v1814_v4 }
 0x471   : > { %2445 = vmatpush3.bf16.msra.mxu1 %v2444_v50  ;;  %2406 = vmatprep.mubr.msk.f32.mxu1 %vm4714_vm1, %v4624_v53 }
 0x472   : > { %2446 = vmatprep.subr.bf16.mxu1 %v2756_v46  ;;  %v1828_v46 = vld [vmem:[#allocation2 + $0x18] sm:$0xff] }
 0x473   : > { %v2453_v41 = vpack.c.bf16 %v1829_v2, %v1828_v46 }
 0x475   : > { %2448 = vmatpush3.bf16.msra.mxu1 %v2447_v47 }
 0x543   : > { %v1904_v60 = vpop.f32.mrb[4].mxu1 }
 0x544   : > { %v1905_v1 = vadd.f32 %v2308_v62, %v1904_v60  ;;  %v2397_v59 = vpop.f32.mrb[5].mxu1 }
 0x546   : > { %v1908_v49 = vmax.f32 %v1905_v1, 0.0 }
 0x548   : > { %2407 = vmatmul.mubr.msk.f32.vlgmr.msra.gmra.mrb[6].mxu1 %vm4716_vm12, %v1908_v49 }
 0x61b   : > { %v1983_v13 = vpop.f32.mrb[6].mxu1 }
 0x61c   : > { %v1984_v39 = vadd.f32 %v2310_v16, %v1983_v13  ;;  %v2408_v9 = vpop.f32.mrb[7].mxu1 }
 0x61e   : > { %2414 = vmatmul.mubr.msk.f32.vlgmr.msra.gmra.mrb[6].mxu0 %vm1992_vm14, %v1984_v39 }
 0x61f   : > { %2420 = vmatprep.mubr.msk.f32.mxu0 %vm4714_vm1, %v4624_v53  ;;  %2454 = vmatpush3.bf16.msra.mxu0 %v2453_v41  ;;  %v2314_v53 = vld [vmem:[%s4437_s5 + $0x3] ss:$0 sm:$0xff] }
 0x6f1   : > { %v2062_v22 = vpop.f32.mrb[6].mxu0 }
 0x6f2   : > { %v2063_v8 = vadd.f32 %v2312_v45, %v2062_v22  ;;  %v2415_v26 = vpop.f32.mrb[7].mxu0 }
 0x6f4   : > { %v2066_v10 = vmax.f32 %v2063_v8, 0.0 }
 0x6f6   : > { %2421 = vmatmul.mubr.msk.f32.vlgmr.msra.gmra.mrb[8].mxu0 %vm1992_vm14, %v2066_v10 }
 0x7c9   : > { %v2141_v3 = vpop.f32.mrb[8].mxu0 }
 0x7ca   : > { %v2142_v33 = vadd.f32 %v2314_v53, %v2141_v3  ;;  %v2422_v52 = vpop.f32.mrb[9].mxu0 }
 0x7cc   : > { %2145 = vst [vmem:[%s284_s8] sm:$0xff] %v2142_v33 }
 0x7cd   : > { %2651 = shalt.err (!%p2648_p7)
}
 0x7ce   : > { %s2652_s13 = scalar_lea.hbm %s4390_s16, 128  ;;  %s2656_s29 = scalar_lea.hbm %s4439_s7, 256 }
 0x7cf   : > { %p2653_p8 = scmp.ne.s32.totalorder %s4390_s16, %s2652_s13  ;;  %p2657_p1 = scmp.lt.u32.totalorder %s4390_s16, %s4439_s7 }
 0x7d0   : > { %p2658_p0 = scmp.lt.u32.totalorder %s2656_s29, %s2652_s13  ;;  %p2660_p6 = scmp.lt.u32.totalorder %s2652_s13, %s4390_s16 }
 0x7d1   : > { %p2654_p11 = pnand %p2653_p8, %p4717_p9 }
 0x7d2   : > { %p2659_p5 = por %p2658_p0, %p2657_p1 }
 0x7d3   : > { %p2655_p13 = pneg %p2654_p11 }
 0x7d4   : > { %p2661_p10 = por %p2660_p6, %p2659_p5 }
 0x7d6   : > { %p2662_p12 = pnand %p2661_p10, %p2655_p13 }
 0x7d8   : > { %2665 = shalt.err (!%p2662_p12)
}
 0x7d9   : > { %2459 = dma.vmem_to_hbm [thread:$0]  (%p4717_p9), %s4392_s9, 128, %s4390_s16, %s2147_s18  }
 0x7da PF: > { %p2471_p2 = scmp.ge.s32.totalorder %s2704_s27, 2  ;;  %s2172_s14 = sand.u32 1, %s2692_s24  }
 0x7db   : > { %p4718_p3 = scmp.ne.s32.totalorder %s4503_s12, 0  ;;  %s2173_s17 = scalar_lea.sflag [#allocation4], %s2172_s14 }
 0x7dd   : > { %p2466_p4 = pnand %p2471_p2, %p4718_p3 }
 0x7df   : > { %2687 = dma.done.wait (!%p2466_p4), %s2173_s17, 128  }
 0x7e0   : > { %2689 = vsyncadd (!%p2466_p4), %s2173_s17, 4294967168  ;;  %p18_p7 = scmp.ge.s32.totalorder %s2824_s30, 4   ;;  %s4719_s24 = smov %s2696_s25 }
 0x7e1   : > { %s4720_s25 = smov %s2700_s26  ;;  %s4721_s26 = smov %s2835_s10 }
 0x7e2   : > { %s4722_s27 = smov %s2824_s30  ;;  %20 = sbr.rel (!%p18_p7) target bundleno = 4 (0x4), region = 88 }
 0x7e9   :  { %2178 = vsyncpa [#allocation3], 1 }
 0x7ea   :  { %2180 = vsyncpa [#allocation3 + $0x1], 1 }
 0x7eb   :  { %2181 = vsyncpa [#allocation4], 1 }
 0x7ec   :  { %2183 = vsyncpa [#allocation4 + $0x1], 1 }

</bundles_post_ra>
